<compile_context>
chip_gen: v7x
topology: tpu7x:2x2x1
jax: 0.10.0
libtpu: 0.0.40
codegen_flags: <defaults>
</compile_context>

<pallas_src>
import functools

import jax
import jax.numpy as jnp
import numpy as np
from jax import lax
from jax.experimental import pallas as pl
from jax.experimental.pallas import tpu as pltpu

LANE = 128
CHUNK = 8                      # decode steps per grid step (multiple of 8 sublanes)
NEG_INF = -1e30
VMEM_LIMIT = 32 * 1024 * 1024


def _round_up(x, m):
    return (x + m - 1) // m * m


# ---------------------------------------------------------------------------
# Kernel 1: chunked GRU recurrence.  Per chunk: one batched input-projection
# matmul, then an unrolled serial loop of CHUNK GRU steps.
# ---------------------------------------------------------------------------
def gru_recurrence_kernel(x_ref,                      # (CHUNK, Hp) f32 gathered embeddings
                          wih_ref, whh_ref,           # (Hp, 3*Hp) bf16, gate blocks 128-aligned
                          bfold_ref, bhn_ref,         # (1, 3*Hp), (1, Hp) f32
                          h0_ref,                     # (1, Hp) f32 initial hidden
                          hall_ref, hlast_ref,        # outputs: (CHUNK, Hp), (1, Hp)
                          gi_sc, h_sc,                # scratch: (CHUNK, 3*Hp), (1, Hp)
                          *, t_total):
    c = pl.program_id(0)
    Hp = h0_ref.shape[1]

    @pl.when(c == 0)
    def _():
        h_sc[...] = h0_ref[...]

    # Phase 1 (off the serial chain): batched input projection for the whole chunk —
    # one (CHUNK, Hp) @ (Hp, 3*Hp) MXU matmul instead of CHUNK degenerate 1-row matmuls.
    gi_sc[...] = (jnp.dot(x_ref[...].astype(jnp.bfloat16), wih_ref[...],
                          preferred_element_type=jnp.float32) + bfold_ref[...])

    whh = whh_ref[...]
    bhn = bhn_ref[...]
    base = c * CHUNK

    # Phase 2: serial GRU recurrence over the chunk (PyTorch semantics, gates [r, z, n]).
    def step(i, h):
        gi = gi_sc[pl.ds(i, 1), :]                                   # (1, 3*Hp)
        gh = jnp.dot(h.astype(jnp.bfloat16), whh,
                     preferred_element_type=jnp.float32)             # (1, 3*Hp)
        r = jax.nn.sigmoid(gi[:, 0:Hp] + gh[:, 0:Hp])
        z = jax.nn.sigmoid(gi[:, Hp:2 * Hp] + gh[:, Hp:2 * Hp])
        n = jnp.tanh(gi[:, 2 * Hp:] + r * (gh[:, 2 * Hp:] + bhn))
        h_cand = (1.0 - z) * n + z * h
        # Padded (out-of-range) time steps must not advance the recurrent state.
        h_new = jnp.where(base + i < t_total, h_cand, h)
        hall_ref[pl.ds(i, 1), :] = h_new
        return h_new

    h_fin = lax.fori_loop(0, CHUNK, step, h_sc[...], unroll=True)
    h_sc[...] = h_fin

    @pl.when(c == pl.num_programs(0) - 1)
    def _():
        hlast_ref[...] = h_fin


# ---------------------------------------------------------------------------
# Kernel 2: batched output projection + stable log-softmax over row tiles.
# ---------------------------------------------------------------------------
def output_logsoftmax_kernel(h_ref, wout_ref, bout_ref, logp_ref):
    logits = (jnp.dot(h_ref[...].astype(jnp.bfloat16), wout_ref[...],
                      preferred_element_type=jnp.float32) + bout_ref[...])
    m = jnp.max(logits, axis=1, keepdims=True)
    shifted = logits - m
    lse = jnp.log(jnp.sum(jnp.exp(shifted), axis=1, keepdims=True))
    logp_ref[...] = shifted - lse


# ---------------------------------------------------------------------------
# Parameter packing: pad H/V to 128 lanes, gate blocks lane-aligned, fold r/z
# biases, store weights bf16 (biases stay f32).
# ---------------------------------------------------------------------------
def pack_params(params):
    H = params["w_ih"].shape[0]
    V = params["w_out"].shape[1]
    Hp = _round_up(H, LANE)
    Vp = _round_up(V, LANE)

    def pad_to(a, shape, fill=0.0):
        out = np.full(shape, fill, np.float32)
        a = np.asarray(a, np.float32)
        out[:a.shape[0], :a.shape[1]] = a
        return out

    def pad_gate_mat(w):                               # (H, 3H) -> (Hp, 3*Hp)
        out = np.zeros((Hp, 3 * Hp), np.float32)
        w = np.asarray(w, np.float32)
        for g in range(3):
            out[:H, g * Hp:g * Hp + H] = w[:, g * H:(g + 1) * H]
        return out

    def pad_gate_vec(b):                               # (1, 3H) -> (1, 3*Hp)
        out = np.zeros((1, 3 * Hp), np.float32)
        b = np.asarray(b, np.float32)
        for g in range(3):
            out[:, g * Hp:g * Hp + H] = b[:, g * H:(g + 1) * H]
        return out

    b_ih = np.asarray(params["b_ih"], np.float32)
    b_hh = np.asarray(params["b_hh"], np.float32)
    b_fold = np.concatenate(
        [b_ih[:, :H] + b_hh[:, :H],                    # r: b_ir + b_hr folded
         b_ih[:, H:2 * H] + b_hh[:, H:2 * H],          # z: b_iz + b_hz folded
         b_ih[:, 2 * H:]], axis=1)                     # n: b_in only (b_hn gated by r)
    b_hn = np.zeros((1, Hp), np.float32)
    b_hn[:, :H] = b_hh[:, 2 * H:]

    b_out = np.full((1, Vp), NEG_INF, np.float32)      # padded vocab columns -> -inf logits
    b_out[:, :V] = np.asarray(params["b_out"], np.float32)

    return {
        "H": H, "V": V, "Hp": Hp, "Vp": Vp,
        "emb": jnp.asarray(pad_to(params["embedding"], (V, Hp)), jnp.bfloat16),
        "w_ih": jnp.asarray(pad_gate_mat(params["w_ih"]), jnp.bfloat16),
        "w_hh": jnp.asarray(pad_gate_mat(params["w_hh"]), jnp.bfloat16),
        "b_fold": jnp.asarray(pad_gate_vec(b_fold)),
        "b_hn": jnp.asarray(b_hn),
        "w_out": jnp.asarray(pad_to(params["w_out"], (Hp, Vp)), jnp.bfloat16),
        "b_out": jnp.asarray(b_out),
    }


# ---------------------------------------------------------------------------
# Wrapper: teacher-forced multi-step decode.
# ---------------------------------------------------------------------------
def gru_decode(tokens, hidden, packed):
    """tokens: (T,) int32; hidden: (1,1,H) f32.  Step t == DecoderRNN.forward(tokens[t], h_{t-1}).
    Returns (log_probs (T, V), final hidden (1, 1, H))."""
    tokens = jnp.asarray(tokens, jnp.int32)
    T = int(tokens.shape[0])
    H, V, Hp, Vp = packed["H"], packed["V"], packed["Hp"], packed["Vp"]
    Tp = _round_up(T, CHUNK)
    nc = Tp // CHUNK

    # Embedding gather hoisted out of the serial recurrence (tokens known up front).
    # x_all is tiny; the full table never needs to be VMEM-resident in the kernel.
    x_all = jnp.zeros((Tp, Hp), jnp.float32).at[:T, :].set(
        packed["emb"][tokens].astype(jnp.float32))

    h0 = jnp.zeros((1, Hp), jnp.float32).at[:, :H].set(
        jnp.asarray(hidden, jnp.float32).reshape(1, H))

    const = lambda c: (0, 0)          # constant block index -> VMEM-resident across chunks
    row = lambda c: (c, 0)            # streamed per chunk

    h_all, h_last = pl.pallas_call(
        functools.partial(gru_recurrence_kernel, t_total=T),
        out_shape=(jax.ShapeDtypeStruct((Tp, Hp), jnp.float32),
                   jax.ShapeDtypeStruct((1, Hp), jnp.float32)),
        grid=(nc,),
        in_specs=[
            pl.BlockSpec((CHUNK, Hp), row),            # gathered embeddings (per chunk)
            pl.BlockSpec((Hp, 3 * Hp), const),         # w_ih (bf16, resident)
            pl.BlockSpec((Hp, 3 * Hp), const),         # w_hh (bf16, resident)
            pl.BlockSpec((1, 3 * Hp), const),          # folded r/z/n input biases
            pl.BlockSpec((1, Hp), const),              # b_hn
            pl.BlockSpec((1, Hp), const),              # h0
        ],
        out_specs=(
            pl.BlockSpec((CHUNK, Hp), row),            # per-step hidden states (streamed)
            pl.BlockSpec((1, Hp), const),              # final hidden (written last chunk)
        ),
        scratch_shapes=[pltpu.VMEM((CHUNK, 3 * Hp), jnp.float32),   # chunk input projection
                        pltpu.VMEM((1, Hp), jnp.float32)],          # carried hidden state
        compiler_params=pltpu.CompilerParams(
            dimension_semantics=("arbitrary",),        # recurrence: sequential axis
            vmem_limit_bytes=VMEM_LIMIT),
    )(x_all, packed["w_ih"], packed["w_hh"], packed["b_fold"], packed["b_hn"], h0)

    # Batched output projection + log-softmax, fully parallel over row tiles.
    # TODO(synk): for large vocab, tile Vp and use a two-pass log-softmax.
    logp = pl.pallas_call(
        output_logsoftmax_kernel,
        out_shape=jax.ShapeDtypeStruct((Tp, Vp), jnp.float32),
        grid=(nc,),
        in_specs=[
            pl.BlockSpec((CHUNK, Hp), row),            # hidden states (per tile)
            pl.BlockSpec((Hp, Vp), const),             # w_out (bf16, resident)
            pl.BlockSpec((1, Vp), const),              # b_out (padded cols = -inf)
        ],
        out_specs=pl.BlockSpec((CHUNK, Vp), row),      # lane- and sublane-dense stores
        compiler_params=pltpu.CompilerParams(
            dimension_semantics=("parallel",),
            vmem_limit_bytes=VMEM_LIMIT),
    )(h_all, packed["w_out"], packed["b_out"])

    return logp[:T, :V], h_last[:, :H].reshape(1, 1, H)


def decoder_rnn_forward(token, hidden, packed):
    """Single-step forward with exact DecoderRNN.forward semantics (T=1 decode)."""
    tok = jnp.reshape(jnp.asarray(token, jnp.int32), (1,))
    logp, h_new = gru_decode(tok, hidden, packed)
    return logp, h_new


def init_params(key, hidden_size, output_size):
    """Deterministic synthetic parameters (GRU/Linear: uniform(-1/sqrt(H), 1/sqrt(H)))."""
    ks = jax.random.split(key, 7)
    bound = 1.0 / np.sqrt(hidden_size)
    u = lambda k, shape: jax.random.uniform(k, shape, jnp.float32, -bound, bound)
    return {
        "embedding": jax.random.normal(ks[0], (output_size, hidden_size), jnp.float32),
        "w_ih": u(ks[1], (hidden_size, 3 * hidden_size)),
        "w_hh": u(ks[2], (hidden_size, 3 * hidden_size)),
        "b_ih": u(ks[3], (1, 3 * hidden_size)),
        "b_hh": u(ks[4], (1, 3 * hidden_size)),
        "w_out": u(ks[5], (hidden_size, output_size)),
        "b_out": u(ks[6], (1, output_size)),
    }


def reference_forward(token, hidden, params):
    """Pure-JAX f32 single-step reference with identical semantics, for validation."""
    H = hidden.shape[-1]
    x = params["embedding"][token][None, :]
    h = hidden.reshape(1, H)
    gi = x @ params["w_ih"] + params["b_ih"]
    gh = h @ params["w_hh"] + params["b_hh"]
    i_r, i_z, i_n = gi[:, :H], gi[:, H:2 * H], gi[:, 2 * H:]
    h_r, h_z, h_n = gh[:, :H], gh[:, H:2 * H], gh[:, 2 * H:]
    r = jax.nn.sigmoid(i_r + h_r)
    z = jax.nn.sigmoid(i_z + h_z)
    n = jnp.tanh(i_n + r * h_n)
    h_new = (1.0 - z) * n + z * h
    logits = h_new @ params["w_out"] + params["b_out"]
    return jax.nn.log_softmax(logits, axis=1), h_new.reshape(1, 1, H)


if __name__ == "__main__":
    hidden_size = 32
    output_size = 64   # vocab size
    seq_len = 12       # deliberately not a multiple of CHUNK: exercises the validity guard

    key = jax.random.PRNGKey(0)
    pkey, tkey = jax.random.split(key)
    params = init_params(pkey, hidden_size, output_size)
    packed = pack_params(params)

    tokens = jax.random.randint(tkey, (seq_len,), 0, output_size, dtype=jnp.int32)
    hidden0 = jnp.zeros((1, 1, hidden_size), jnp.float32)   # DecoderRNN.init_hidden()

    # Fused multi-step decode: chunked recurrence kernel + batched projection kernel.
    logp_seq, h_last = gru_decode(tokens, hidden0, packed)
    jax.block_until_ready((logp_seq, h_last))

    # Single-step path (exact module forward signature).
    logp_1, h_1 = decoder_rnn_forward(tokens[0], hidden0, packed)
    jax.block_until_ready((logp_1, h_1))

    # Pure-JAX f32 reference: loop the single-step module forward.
    ref_lps, h_ref = [], hidden0
    for t in range(seq_len):
        lp, h_ref = reference_forward(tokens[t], h_ref, params)
        ref_lps.append(lp)
    ref_lp_seq = jnp.concatenate(ref_lps, axis=0)
    ref_lp0, ref_h0 = reference_forward(tokens[0], hidden0, params)

    # Tolerances relaxed vs the f32 reference because weights are stored in bf16.
    TOL = dict(rtol=5e-2, atol=5e-2)
    assert logp_seq.shape == (seq_len, output_size)
    assert h_last.shape == (1, 1, hidden_size)
    assert np.allclose(np.asarray(logp_seq), np.asarray(ref_lp_seq), **TOL)
    assert np.allclose(np.asarray(h_last), np.asarray(h_ref), **TOL)
    assert logp_1.shape == (1, output_size) and h_1.shape == (1, 1, hidden_size)
    assert np.allclose(np.asarray(logp_1), np.asarray(ref_lp0), **TOL)
    assert np.allclose(np.asarray(h_1), np.asarray(ref_h0), **TOL)

    print("KERNEL_OK")
</pallas_src>

<mosaic_0001>
module attributes {stable_mosaic.version = 11 : i64} {
  func.func @gru_recurrence_kernel(%arg0: i32, %arg1: memref<8x128xf32, #tpu.memory_space<vmem>>, %arg2: memref<128x384xbf16, #tpu.memory_space<vmem>>, %arg3: memref<128x384xbf16, #tpu.memory_space<vmem>>, %arg4: memref<1x384xf32, #tpu.memory_space<vmem>>, %arg5: memref<1x128xf32, #tpu.memory_space<vmem>>, %arg6: memref<1x128xf32, #tpu.memory_space<vmem>>, %arg7: memref<8x128xf32, #tpu.memory_space<vmem>>, %arg8: memref<1x128xf32, #tpu.memory_space<vmem>>, %arg9: memref<8x384xf32, #tpu.memory_space<vmem>>, %arg10: memref<1x128xf32, #tpu.memory_space<vmem>>) attributes {dimension_semantics = [#tpu.dimension_semantics<arbitrary>], iteration_bounds = array<i64: 2>, scalar_prefetch = 0 : i64, scratch_operands = 2 : i64, tpu.core_type = #tpu.core_type<tc>, window_params = [{transform_indices = @transform_0, window_bounds = array<i64: 8, 128>}, {pipeline_mode = #tpu.pipeline_mode<synchronous>, transform_indices = @transform_1, window_bounds = array<i64: 128, 384>}, {pipeline_mode = #tpu.pipeline_mode<synchronous>, transform_indices = @transform_2, window_bounds = array<i64: 128, 384>}, {pipeline_mode = #tpu.pipeline_mode<synchronous>, transform_indices = @transform_3, window_bounds = array<i64: 1, 384>}, {pipeline_mode = #tpu.pipeline_mode<synchronous>, transform_indices = @transform_4, window_bounds = array<i64: 1, 128>}, {pipeline_mode = #tpu.pipeline_mode<synchronous>, transform_indices = @transform_5, window_bounds = array<i64: 1, 128>}, {transform_indices = @transform_6, window_bounds = array<i64: 8, 128>}, {pipeline_mode = #tpu.pipeline_mode<synchronous>, transform_indices = @transform_7, window_bounds = array<i64: 1, 128>}]} {
    %c0_i32 = arith.constant 0 : i32
    %0 = arith.cmpi eq, %arg0, %c0_i32 : i32
    %1 = arith.extui %0 : i1 to i32
    %c0_i32_0 = arith.constant 0 : i32
    %2 = arith.cmpi ne, %1, %c0_i32_0 : i32
    scf.if %2 {
      %c0_75 = arith.constant 0 : index
      %c0_76 = arith.constant 0 : index
      %307 = vector.load %arg6[%c0_75, %c0_76] : memref<1x128xf32, #tpu.memory_space<vmem>>, vector<1x128xf32>
      %c0_77 = arith.constant 0 : index
      %c0_78 = arith.constant 0 : index
      %308 = vector.load %arg10[%c0_77, %c0_78] : memref<1x128xf32, #tpu.memory_space<vmem>>, vector<1x128xf32>
      tpu.vector_store %arg10[%c0_77, %c0_78], %307 {strides = array<i32>} : memref<1x128xf32, #tpu.memory_space<vmem>>, vector<1x128xf32>,
    } else {
    }
    %c0 = arith.constant 0 : index
    %c0_1 = arith.constant 0 : index
    %3 = vector.load %arg1[%c0, %c0_1] : memref<8x128xf32, #tpu.memory_space<vmem>>, vector<8x128xf32>
    %4 = arith.truncf %3 : vector<8x128xf32> to vector<8x128xbf16>
    %c0_2 = arith.constant 0 : index
    %c0_3 = arith.constant 0 : index
    %5 = vector.load %arg2[%c0_2, %c0_3] : memref<128x384xbf16, #tpu.memory_space<vmem>>, vector<128x384xbf16>
    %cst = arith.constant dense<0.000000e+00> : vector<8x384xf32>
    %6 = tpu.matmul %4, %5, %cst {dimension_numbers = #tpu.dot_dimension_numbers<[1], [0], [0], [1], [0, 0, 1, 1], [], []>} : vector<8x128xbf16>, vector<128x384xbf16>, vector<8x384xf32> -> vector<8x384xf32>
    %c0_4 = arith.constant 0 : index
    %c0_5 = arith.constant 0 : index
    %7 = vector.load %arg4[%c0_4, %c0_5] : memref<1x384xf32, #tpu.memory_space<vmem>>, vector<1x384xf32>
    %8 = vector.broadcast %7 : vector<1x384xf32> to vector<8x384xf32>
    %9 = arith.addf %6, %8 : vector<8x384xf32>
    %c0_6 = arith.constant 0 : index
    %c0_7 = arith.constant 0 : index
    %10 = vector.load %arg9[%c0_6, %c0_7] : memref<8x384xf32, #tpu.memory_space<vmem>>, vector<8x384xf32>
    tpu.vector_store %arg9[%c0_6, %c0_7], %9 {strides = array<i32>} : memref<8x384xf32, #tpu.memory_space<vmem>>, vector<8x384xf32>,
    %c0_8 = arith.constant 0 : index
    %c0_9 = arith.constant 0 : index
    %11 = vector.load %arg3[%c0_8, %c0_9] : memref<128x384xbf16, #tpu.memory_space<vmem>>, vector<128x384xbf16>
    %c0_10 = arith.constant 0 : index
    %c0_11 = arith.constant 0 : index
    %12 = vector.load %arg5[%c0_10, %c0_11] : memref<1x128xf32, #tpu.memory_space<vmem>>, vector<1x128xf32>
    %c8_i32 = arith.constant 8 : i32
    %13 = arith.muli %arg0, %c8_i32 : i32
    %c0_12 = arith.constant 0 : index
    %c0_13 = arith.constant 0 : index
    %14 = vector.load %arg10[%c0_12, %c0_13] : memref<1x128xf32, #tpu.memory_space<vmem>>, vector<1x128xf32>
    %c0_i32_14 = arith.constant 0 : i32
    %15 = arith.index_cast %c0_i32_14 : i32 to index
    %c0_15 = arith.constant 0 : index
    %16 = vector.load %arg9[%15, %c0_15] : memref<8x384xf32, #tpu.memory_space<vmem>>, vector<1x384xf32>
    %17 = arith.truncf %14 : vector<1x128xf32> to vector<1x128xbf16>
    %cst_16 = arith.constant dense<0.000000e+00> : vector<1x384xf32>
    %18 = tpu.matmul %17, %11, %cst_16 {dimension_numbers = #tpu.dot_dimension_numbers<[1], [0], [0], [1], [0, 0, 1, 1], [], []>} : vector<1x128xbf16>, vector<128x384xbf16>, vector<1x384xf32> -> vector<1x384xf32>
    %19 = vector.extract_strided_slice %16 {offsets = [0, 0], sizes = [1, 128], strides = [1, 1]} : vector<1x384xf32> to vector<1x128xf32>
    %20 = vector.extract_strided_slice %18 {offsets = [0, 0], sizes = [1, 128], strides = [1, 1]} : vector<1x384xf32> to vector<1x128xf32>
    %21 = arith.addf %19, %20 : vector<1x128xf32>
    %22 = arith.negf %21 : vector<1x128xf32>
    %23 = math.exp %22 : vector<1x128xf32>
    %cst_17 = arith.constant 1.000000e+00 : f32
    %24 = vector.broadcast %cst_17 : f32 to vector<1x128xf32>
    %25 = arith.addf %24, %23 : vector<1x128xf32>
    %26 = arith.divf %24, %25 : vector<1x128xf32>
    %27 = vector.extract_strided_slice %16 {offsets = [0, 128], sizes = [1, 128], strides = [1, 1]} : vector<1x384xf32> to vector<1x128xf32>
    %28 = vector.extract_strided_slice %18 {offsets = [0, 128], sizes = [1, 128], strides = [1, 1]} : vector<1x384xf32> to vector<1x128xf32>
    %29 = arith.addf %27, %28 : vector<1x128xf32>
    %30 = arith.negf %29 : vector<1x128xf32>
    %31 = math.exp %30 : vector<1x128xf32>
    %cst_18 = arith.constant 1.000000e+00 : f32
    %32 = vector.broadcast %cst_18 : f32 to vector<1x128xf32>
    %33 = arith.addf %32, %31 : vector<1x128xf32>
    %34 = arith.divf %32, %33 : vector<1x128xf32>
    %35 = vector.extract_strided_slice %16 {offsets = [0, 256], sizes = [1, 128], strides = [1, 1]} : vector<1x384xf32> to vector<1x128xf32>
    %36 = vector.extract_strided_slice %18 {offsets = [0, 256], sizes = [1, 128], strides = [1, 1]} : vector<1x384xf32> to vector<1x128xf32>
    %37 = arith.addf %36, %12 : vector<1x128xf32>
    %38 = arith.mulf %26, %37 : vector<1x128xf32>
    %39 = arith.addf %35, %38 : vector<1x128xf32>
    %40 = math.tanh %39 : vector<1x128xf32>
    %cst_19 = arith.constant 1.000000e+00 : f32
    %41 = vector.broadcast %cst_19 : f32 to vector<1x128xf32>
    %42 = arith.subf %41, %34 : vector<1x128xf32>
    %43 = arith.mulf %42, %40 : vector<1x128xf32>
    %44 = arith.mulf %34, %14 : vector<1x128xf32>
    %45 = arith.addf %43, %44 : vector<1x128xf32>
    %46 = arith.addi %13, %c0_i32_14 : i32
    %c12_i32 = arith.constant 12 : i32
    %47 = arith.cmpi slt, %46, %c12_i32 : i32
    %48 = arith.select %47, %45, %14 : vector<1x128xf32>
    %49 = arith.index_cast %c0_i32_14 : i32 to index
    %c0_20 = arith.constant 0 : index
    %50 = vector.load %arg7[%49, %c0_20] : memref<8x128xf32, #tpu.memory_space<vmem>>, vector<1x128xf32>
    tpu.vector_store %arg7[%49, %c0_20], %48 {strides = array<i32>} : memref<8x128xf32, #tpu.memory_space<vmem>>, vector<1x128xf32>,
    %c1_i32 = arith.constant 1 : i32
    %51 = arith.index_cast %c1_i32 : i32 to index
    %c0_21 = arith.constant 0 : index
    %52 = vector.load %arg9[%51, %c0_21] : memref<8x384xf32, #tpu.memory_space<vmem>>, vector<1x384xf32>
    %53 = arith.truncf %48 : vector<1x128xf32> to vector<1x128xbf16>
    %cst_22 = arith.constant dense<0.000000e+00> : vector<1x384xf32>
    %54 = tpu.matmul %53, %11, %cst_22 {dimension_numbers = #tpu.dot_dimension_numbers<[1], [0], [0], [1], [0, 0, 1, 1], [], []>} : vector<1x128xbf16>, vector<128x384xbf16>, vector<1x384xf32> -> vector<1x384xf32>
    %55 = vector.extract_strided_slice %52 {offsets = [0, 0], sizes = [1, 128], strides = [1, 1]} : vector<1x384xf32> to vector<1x128xf32>
    %56 = vector.extract_strided_slice %54 {offsets = [0, 0], sizes = [1, 128], strides = [1, 1]} : vector<1x384xf32> to vector<1x128xf32>
    %57 = arith.addf %55, %56 : vector<1x128xf32>
    %58 = arith.negf %57 : vector<1x128xf32>
    %59 = math.exp %58 : vector<1x128xf32>
    %cst_23 = arith.constant 1.000000e+00 : f32
    %60 = vector.broadcast %cst_23 : f32 to vector<1x128xf32>
    %61 = arith.addf %60, %59 : vector<1x128xf32>
    %62 = arith.divf %60, %61 : vector<1x128xf32>
    %63 = vector.extract_strided_slice %52 {offsets = [0, 128], sizes = [1, 128], strides = [1, 1]} : vector<1x384xf32> to vector<1x128xf32>
    %64 = vector.extract_strided_slice %54 {offsets = [0, 128], sizes = [1, 128], strides = [1, 1]} : vector<1x384xf32> to vector<1x128xf32>
    %65 = arith.addf %63, %64 : vector<1x128xf32>
    %66 = arith.negf %65 : vector<1x128xf32>
    %67 = math.exp %66 : vector<1x128xf32>
    %cst_24 = arith.constant 1.000000e+00 : f32
    %68 = vector.broadcast %cst_24 : f32 to vector<1x128xf32>
    %69 = arith.addf %68, %67 : vector<1x128xf32>
    %70 = arith.divf %68, %69 : vector<1x128xf32>
    %71 = vector.extract_strided_slice %52 {offsets = [0, 256], sizes = [1, 128], strides = [1, 1]} : vector<1x384xf32> to vector<1x128xf32>
    %72 = vector.extract_strided_slice %54 {offsets = [0, 256], sizes = [1, 128], strides = [1, 1]} : vector<1x384xf32> to vector<1x128xf32>
    %73 = arith.addf %72, %12 : vector<1x128xf32>
    %74 = arith.mulf %62, %73 : vector<1x128xf32>
    %75 = arith.addf %71, %74 : vector<1x128xf32>
    %76 = math.tanh %75 : vector<1x128xf32>
    %cst_25 = arith.constant 1.000000e+00 : f32
    %77 = vector.broadcast %cst_25 : f32 to vector<1x128xf32>
    %78 = arith.subf %77, %70 : vector<1x128xf32>
    %79 = arith.mulf %78, %76 : vector<1x128xf32>
    %80 = arith.mulf %70, %48 : vector<1x128xf32>
    %81 = arith.addf %79, %80 : vector<1x128xf32>
    %82 = arith.addi %13, %c1_i32 : i32
    %c12_i32_26 = arith.constant 12 : i32
    %83 = arith.cmpi slt, %82, %c12_i32_26 : i32
    %84 = arith.select %83, %81, %48 : vector<1x128xf32>
    %85 = arith.index_cast %c1_i32 : i32 to index
    %c0_27 = arith.constant 0 : index
    %86 = vector.load %arg7[%85, %c0_27] : memref<8x128xf32, #tpu.memory_space<vmem>>, vector<1x128xf32>
    tpu.vector_store %arg7[%85, %c0_27], %84 {strides = array<i32>} : memref<8x128xf32, #tpu.memory_space<vmem>>, vector<1x128xf32>,
    %c2_i32 = arith.constant 2 : i32
    %87 = arith.index_cast %c2_i32 : i32 to index
    %c0_28 = arith.constant 0 : index
    %88 = vector.load %arg9[%87, %c0_28] : memref<8x384xf32, #tpu.memory_space<vmem>>, vector<1x384xf32>
    %89 = arith.truncf %84 : vector<1x128xf32> to vector<1x128xbf16>
    %cst_29 = arith.constant dense<0.000000e+00> : vector<1x384xf32>
    %90 = tpu.matmul %89, %11, %cst_29 {dimension_numbers = #tpu.dot_dimension_numbers<[1], [0], [0], [1], [0, 0, 1, 1], [], []>} : vector<1x128xbf16>, vector<128x384xbf16>, vector<1x384xf32> -> vector<1x384xf32>
    %91 = vector.extract_strided_slice %88 {offsets = [0, 0], sizes = [1, 128], strides = [1, 1]} : vector<1x384xf32> to vector<1x128xf32>
    %92 = vector.extract_strided_slice %90 {offsets = [0, 0], sizes = [1, 128], strides = [1, 1]} : vector<1x384xf32> to vector<1x128xf32>
    %93 = arith.addf %91, %92 : vector<1x128xf32>
    %94 = arith.negf %93 : vector<1x128xf32>
    %95 = math.exp %94 : vector<1x128xf32>
    %cst_30 = arith.constant 1.000000e+00 : f32
    %96 = vector.broadcast %cst_30 : f32 to vector<1x128xf32>
    %97 = arith.addf %96, %95 : vector<1x128xf32>
    %98 = arith.divf %96, %97 : vector<1x128xf32>
    %99 = vector.extract_strided_slice %88 {offsets = [0, 128], sizes = [1, 128], strides = [1, 1]} : vector<1x384xf32> to vector<1x128xf32>
    %100 = vector.extract_strided_slice %90 {offsets = [0, 128], sizes = [1, 128], strides = [1, 1]} : vector<1x384xf32> to vector<1x128xf32>
    %101 = arith.addf %99, %100 : vector<1x128xf32>
    %102 = arith.negf %101 : vector<1x128xf32>
    %103 = math.exp %102 : vector<1x128xf32>
    %cst_31 = arith.constant 1.000000e+00 : f32
    %104 = vector.broadcast %cst_31 : f32 to vector<1x128xf32>
    %105 = arith.addf %104, %103 : vector<1x128xf32>
    %106 = arith.divf %104, %105 : vector<1x128xf32>
    %107 = vector.extract_strided_slice %88 {offsets = [0, 256], sizes = [1, 128], strides = [1, 1]} : vector<1x384xf32> to vector<1x128xf32>
    %108 = vector.extract_strided_slice %90 {offsets = [0, 256], sizes = [1, 128], strides = [1, 1]} : vector<1x384xf32> to vector<1x128xf32>
    %109 = arith.addf %108, %12 : vector<1x128xf32>
    %110 = arith.mulf %98, %109 : vector<1x128xf32>
    %111 = arith.addf %107, %110 : vector<1x128xf32>
    %112 = math.tanh %111 : vector<1x128xf32>
    %cst_32 = arith.constant 1.000000e+00 : f32
    %113 = vector.broadcast %cst_32 : f32 to vector<1x128xf32>
    %114 = arith.subf %113, %106 : vector<1x128xf32>
    %115 = arith.mulf %114, %112 : vector<1x128xf32>
    %116 = arith.mulf %106, %84 : vector<1x128xf32>
    %117 = arith.addf %115, %116 : vector<1x128xf32>
    %118 = arith.addi %13, %c2_i32 : i32
    %c12_i32_33 = arith.constant 12 : i32
    %119 = arith.cmpi slt, %118, %c12_i32_33 : i32
    %120 = arith.select %119, %117, %84 : vector<1x128xf32>
    %121 = arith.index_cast %c2_i32 : i32 to index
    %c0_34 = arith.constant 0 : index
    %122 = vector.load %arg7[%121, %c0_34] : memref<8x128xf32, #tpu.memory_space<vmem>>, vector<1x128xf32>
    tpu.vector_store %arg7[%121, %c0_34], %120 {strides = array<i32>} : memref<8x128xf32, #tpu.memory_space<vmem>>, vector<1x128xf32>,
    %c3_i32 = arith.constant 3 : i32
    %123 = arith.index_cast %c3_i32 : i32 to index
    %c0_35 = arith.constant 0 : index
    %124 = vector.load %arg9[%123, %c0_35] : memref<8x384xf32, #tpu.memory_space<vmem>>, vector<1x384xf32>
    %125 = arith.truncf %120 : vector<1x128xf32> to vector<1x128xbf16>
    %cst_36 = arith.constant dense<0.000000e+00> : vector<1x384xf32>
    %126 = tpu.matmul %125, %11, %cst_36 {dimension_numbers = #tpu.dot_dimension_numbers<[1], [0], [0], [1], [0, 0, 1, 1], [], []>} : vector<1x128xbf16>, vector<128x384xbf16>, vector<1x384xf32> -> vector<1x384xf32>
    %127 = vector.extract_strided_slice %124 {offsets = [0, 0], sizes = [1, 128], strides = [1, 1]} : vector<1x384xf32> to vector<1x128xf32>
    %128 = vector.extract_strided_slice %126 {offsets = [0, 0], sizes = [1, 128], strides = [1, 1]} : vector<1x384xf32> to vector<1x128xf32>
    %129 = arith.addf %127, %128 : vector<1x128xf32>
    %130 = arith.negf %129 : vector<1x128xf32>
    %131 = math.exp %130 : vector<1x128xf32>
    %cst_37 = arith.constant 1.000000e+00 : f32
    %132 = vector.broadcast %cst_37 : f32 to vector<1x128xf32>
    %133 = arith.addf %132, %131 : vector<1x128xf32>
    %134 = arith.divf %132, %133 : vector<1x128xf32>
    %135 = vector.extract_strided_slice %124 {offsets = [0, 128], sizes = [1, 128], strides = [1, 1]} : vector<1x384xf32> to vector<1x128xf32>
    %136 = vector.extract_strided_slice %126 {offsets = [0, 128], sizes = [1, 128], strides = [1, 1]} : vector<1x384xf32> to vector<1x128xf32>
    %137 = arith.addf %135, %136 : vector<1x128xf32>
    %138 = arith.negf %137 : vector<1x128xf32>
    %139 = math.exp %138 : vector<1x128xf32>
    %cst_38 = arith.constant 1.000000e+00 : f32
    %140 = vector.broadcast %cst_38 : f32 to vector<1x128xf32>
    %141 = arith.addf %140, %139 : vector<1x128xf32>
    %142 = arith.divf %140, %141 : vector<1x128xf32>
    %143 = vector.extract_strided_slice %124 {offsets = [0, 256], sizes = [1, 128], strides = [1, 1]} : vector<1x384xf32> to vector<1x128xf32>
    %144 = vector.extract_strided_slice %126 {offsets = [0, 256], sizes = [1, 128], strides = [1, 1]} : vector<1x384xf32> to vector<1x128xf32>
    %145 = arith.addf %144, %12 : vector<1x128xf32>
    %146 = arith.mulf %134, %145 : vector<1x128xf32>
    %147 = arith.addf %143, %146 : vector<1x128xf32>
    %148 = math.tanh %147 : vector<1x128xf32>
    %cst_39 = arith.constant 1.000000e+00 : f32
    %149 = vector.broadcast %cst_39 : f32 to vector<1x128xf32>
    %150 = arith.subf %149, %142 : vector<1x128xf32>
    %151 = arith.mulf %150, %148 : vector<1x128xf32>
    %152 = arith.mulf %142, %120 : vector<1x128xf32>
    %153 = arith.addf %151, %152 : vector<1x128xf32>
    %154 = arith.addi %13, %c3_i32 : i32
    %c12_i32_40 = arith.constant 12 : i32
    %155 = arith.cmpi slt, %154, %c12_i32_40 : i32
    %156 = arith.select %155, %153, %120 : vector<1x128xf32>
    %157 = arith.index_cast %c3_i32 : i32 to index
    %c0_41 = arith.constant 0 : index
    %158 = vector.load %arg7[%157, %c0_41] : memref<8x128xf32, #tpu.memory_space<vmem>>, vector<1x128xf32>
    tpu.vector_store %arg7[%157, %c0_41], %156 {strides = array<i32>} : memref<8x128xf32, #tpu.memory_space<vmem>>, vector<1x128xf32>,
    %c4_i32 = arith.constant 4 : i32
    %159 = arith.index_cast %c4_i32 : i32 to index
    %c0_42 = arith.constant 0 : index
    %160 = vector.load %arg9[%159, %c0_42] : memref<8x384xf32, #tpu.memory_space<vmem>>, vector<1x384xf32>
    %161 = arith.truncf %156 : vector<1x128xf32> to vector<1x128xbf16>
    %cst_43 = arith.constant dense<0.000000e+00> : vector<1x384xf32>
    %162 = tpu.matmul %161, %11, %cst_43 {dimension_numbers = #tpu.dot_dimension_numbers<[1], [0], [0], [1], [0, 0, 1, 1], [], []>} : vector<1x128xbf16>, vector<128x384xbf16>, vector<1x384xf32> -> vector<1x384xf32>
    %163 = vector.extract_strided_slice %160 {offsets = [0, 0], sizes = [1, 128], strides = [1, 1]} : vector<1x384xf32> to vector<1x128xf32>
    %164 = vector.extract_strided_slice %162 {offsets = [0, 0], sizes = [1, 128], strides = [1, 1]} : vector<1x384xf32> to vector<1x128xf32>
    %165 = arith.addf %163, %164 : vector<1x128xf32>
    %166 = arith.negf %165 : vector<1x128xf32>
    %167 = math.exp %166 : vector<1x128xf32>
    %cst_44 = arith.constant 1.000000e+00 : f32
    %168 = vector.broadcast %cst_44 : f32 to vector<1x128xf32>
    %169 = arith.addf %168, %167 : vector<1x128xf32>
    %170 = arith.divf %168, %169 : vector<1x128xf32>
    %171 = vector.extract_strided_slice %160 {offsets = [0, 128], sizes = [1, 128], strides = [1, 1]} : vector<1x384xf32> to vector<1x128xf32>
    %172 = vector.extract_strided_slice %162 {offsets = [0, 128], sizes = [1, 128], strides = [1, 1]} : vector<1x384xf32> to vector<1x128xf32>
    %173 = arith.addf %171, %172 : vector<1x128xf32>
    %174 = arith.negf %173 : vector<1x128xf32>
    %175 = math.exp %174 : vector<1x128xf32>
    %cst_45 = arith.constant 1.000000e+00 : f32
    %176 = vector.broadcast %cst_45 : f32 to vector<1x128xf32>
    %177 = arith.addf %176, %175 : vector<1x128xf32>
    %178 = arith.divf %176, %177 : vector<1x128xf32>
    %179 = vector.extract_strided_slice %160 {offsets = [0, 256], sizes = [1, 128], strides = [1, 1]} : vector<1x384xf32> to vector<1x128xf32>
    %180 = vector.extract_strided_slice %162 {offsets = [0, 256], sizes = [1, 128], strides = [1, 1]} : vector<1x384xf32> to vector<1x128xf32>
    %181 = arith.addf %180, %12 : vector<1x128xf32>
    %182 = arith.mulf %170, %181 : vector<1x128xf32>
    %183 = arith.addf %179, %182 : vector<1x128xf32>
    %184 = math.tanh %183 : vector<1x128xf32>
    %cst_46 = arith.constant 1.000000e+00 : f32
    %185 = vector.broadcast %cst_46 : f32 to vector<1x128xf32>
    %186 = arith.subf %185, %178 : vector<1x128xf32>
    %187 = arith.mulf %186, %184 : vector<1x128xf32>
    %188 = arith.mulf %178, %156 : vector<1x128xf32>
    %189 = arith.addf %187, %188 : vector<1x128xf32>
    %190 = arith.addi %13, %c4_i32 : i32
    %c12_i32_47 = arith.constant 12 : i32
    %191 = arith.cmpi slt, %190, %c12_i32_47 : i32
    %192 = arith.select %191, %189, %156 : vector<1x128xf32>
    %193 = arith.index_cast %c4_i32 : i32 to index
    %c0_48 = arith.constant 0 : index
    %194 = vector.load %arg7[%193, %c0_48] : memref<8x128xf32, #tpu.memory_space<vmem>>, vector<1x128xf32>
    tpu.vector_store %arg7[%193, %c0_48], %192 {strides = array<i32>} : memref<8x128xf32, #tpu.memory_space<vmem>>, vector<1x128xf32>,
    %c5_i32 = arith.constant 5 : i32
    %195 = arith.index_cast %c5_i32 : i32 to index
    %c0_49 = arith.constant 0 : index
    %196 = vector.load %arg9[%195, %c0_49] : memref<8x384xf32, #tpu.memory_space<vmem>>, vector<1x384xf32>
    %197 = arith.truncf %192 : vector<1x128xf32> to vector<1x128xbf16>
    %cst_50 = arith.constant dense<0.000000e+00> : vector<1x384xf32>
    %198 = tpu.matmul %197, %11, %cst_50 {dimension_numbers = #tpu.dot_dimension_numbers<[1], [0], [0], [1], [0, 0, 1, 1], [], []>} : vector<1x128xbf16>, vector<128x384xbf16>, vector<1x384xf32> -> vector<1x384xf32>
    %199 = vector.extract_strided_slice %196 {offsets = [0, 0], sizes = [1, 128], strides = [1, 1]} : vector<1x384xf32> to vector<1x128xf32>
    %200 = vector.extract_strided_slice %198 {offsets = [0, 0], sizes = [1, 128], strides = [1, 1]} : vector<1x384xf32> to vector<1x128xf32>
    %201 = arith.addf %199, %200 : vector<1x128xf32>
    %202 = arith.negf %201 : vector<1x128xf32>
    %203 = math.exp %202 : vector<1x128xf32>
    %cst_51 = arith.constant 1.000000e+00 : f32
    %204 = vector.broadcast %cst_51 : f32 to vector<1x128xf32>
    %205 = arith.addf %204, %203 : vector<1x128xf32>
    %206 = arith.divf %204, %205 : vector<1x128xf32>
    %207 = vector.extract_strided_slice %196 {offsets = [0, 128], sizes = [1, 128], strides = [1, 1]} : vector<1x384xf32> to vector<1x128xf32>
    %208 = vector.extract_strided_slice %198 {offsets = [0, 128], sizes = [1, 128], strides = [1, 1]} : vector<1x384xf32> to vector<1x128xf32>
    %209 = arith.addf %207, %208 : vector<1x128xf32>
    %210 = arith.negf %209 : vector<1x128xf32>
    %211 = math.exp %210 : vector<1x128xf32>
    %cst_52 = arith.constant 1.000000e+00 : f32
    %212 = vector.broadcast %cst_52 : f32 to vector<1x128xf32>
    %213 = arith.addf %212, %211 : vector<1x128xf32>
    %214 = arith.divf %212, %213 : vector<1x128xf32>
    %215 = vector.extract_strided_slice %196 {offsets = [0, 256], sizes = [1, 128], strides = [1, 1]} : vector<1x384xf32> to vector<1x128xf32>
    %216 = vector.extract_strided_slice %198 {offsets = [0, 256], sizes = [1, 128], strides = [1, 1]} : vector<1x384xf32> to vector<1x128xf32>
    %217 = arith.addf %216, %12 : vector<1x128xf32>
    %218 = arith.mulf %206, %217 : vector<1x128xf32>
    %219 = arith.addf %215, %218 : vector<1x128xf32>
    %220 = math.tanh %219 : vector<1x128xf32>
    %cst_53 = arith.constant 1.000000e+00 : f32
    %221 = vector.broadcast %cst_53 : f32 to vector<1x128xf32>
    %222 = arith.subf %221, %214 : vector<1x128xf32>
    %223 = arith.mulf %222, %220 : vector<1x128xf32>
    %224 = arith.mulf %214, %192 : vector<1x128xf32>
    %225 = arith.addf %223, %224 : vector<1x128xf32>
    %226 = arith.addi %13, %c5_i32 : i32
    %c12_i32_54 = arith.constant 12 : i32
    %227 = arith.cmpi slt, %226, %c12_i32_54 : i32
    %228 = arith.select %227, %225, %192 : vector<1x128xf32>
    %229 = arith.index_cast %c5_i32 : i32 to index
    %c0_55 = arith.constant 0 : index
    %230 = vector.load %arg7[%229, %c0_55] : memref<8x128xf32, #tpu.memory_space<vmem>>, vector<1x128xf32>
    tpu.vector_store %arg7[%229, %c0_55], %228 {strides = array<i32>} : memref<8x128xf32, #tpu.memory_space<vmem>>, vector<1x128xf32>,
    %c6_i32 = arith.constant 6 : i32
    %231 = arith.index_cast %c6_i32 : i32 to index
    %c0_56 = arith.constant 0 : index
    %232 = vector.load %arg9[%231, %c0_56] : memref<8x384xf32, #tpu.memory_space<vmem>>, vector<1x384xf32>
    %233 = arith.truncf %228 : vector<1x128xf32> to vector<1x128xbf16>
    %cst_57 = arith.constant dense<0.000000e+00> : vector<1x384xf32>
    %234 = tpu.matmul %233, %11, %cst_57 {dimension_numbers = #tpu.dot_dimension_numbers<[1], [0], [0], [1], [0, 0, 1, 1], [], []>} : vector<1x128xbf16>, vector<128x384xbf16>, vector<1x384xf32> -> vector<1x384xf32>
    %235 = vector.extract_strided_slice %232 {offsets = [0, 0], sizes = [1, 128], strides = [1, 1]} : vector<1x384xf32> to vector<1x128xf32>
    %236 = vector.extract_strided_slice %234 {offsets = [0, 0], sizes = [1, 128], strides = [1, 1]} : vector<1x384xf32> to vector<1x128xf32>
    %237 = arith.addf %235, %236 : vector<1x128xf32>
    %238 = arith.negf %237 : vector<1x128xf32>
    %239 = math.exp %238 : vector<1x128xf32>
    %cst_58 = arith.constant 1.000000e+00 : f32
    %240 = vector.broadcast %cst_58 : f32 to vector<1x128xf32>
    %241 = arith.addf %240, %239 : vector<1x128xf32>
    %242 = arith.divf %240, %241 : vector<1x128xf32>
    %243 = vector.extract_strided_slice %232 {offsets = [0, 128], sizes = [1, 128], strides = [1, 1]} : vector<1x384xf32> to vector<1x128xf32>
    %244 = vector.extract_strided_slice %234 {offsets = [0, 128], sizes = [1, 128], strides = [1, 1]} : vector<1x384xf32> to vector<1x128xf32>
    %245 = arith.addf %243, %244 : vector<1x128xf32>
    %246 = arith.negf %245 : vector<1x128xf32>
    %247 = math.exp %246 : vector<1x128xf32>
    %cst_59 = arith.constant 1.000000e+00 : f32
    %248 = vector.broadcast %cst_59 : f32 to vector<1x128xf32>
    %249 = arith.addf %248, %247 : vector<1x128xf32>
    %250 = arith.divf %248, %249 : vector<1x128xf32>
    %251 = vector.extract_strided_slice %232 {offsets = [0, 256], sizes = [1, 128], strides = [1, 1]} : vector<1x384xf32> to vector<1x128xf32>
    %252 = vector.extract_strided_slice %234 {offsets = [0, 256], sizes = [1, 128], strides = [1, 1]} : vector<1x384xf32> to vector<1x128xf32>
    %253 = arith.addf %252, %12 : vector<1x128xf32>
    %254 = arith.mulf %242, %253 : vector<1x128xf32>
    %255 = arith.addf %251, %254 : vector<1x128xf32>
    %256 = math.tanh %255 : vector<1x128xf32>
    %cst_60 = arith.constant 1.000000e+00 : f32
    %257 = vector.broadcast %cst_60 : f32 to vector<1x128xf32>
    %258 = arith.subf %257, %250 : vector<1x128xf32>
    %259 = arith.mulf %258, %256 : vector<1x128xf32>
    %260 = arith.mulf %250, %228 : vector<1x128xf32>
    %261 = arith.addf %259, %260 : vector<1x128xf32>
    %262 = arith.addi %13, %c6_i32 : i32
    %c12_i32_61 = arith.constant 12 : i32
    %263 = arith.cmpi slt, %262, %c12_i32_61 : i32
    %264 = arith.select %263, %261, %228 : vector<1x128xf32>
    %265 = arith.index_cast %c6_i32 : i32 to index
    %c0_62 = arith.constant 0 : index
    %266 = vector.load %arg7[%265, %c0_62] : memref<8x128xf32, #tpu.memory_space<vmem>>, vector<1x128xf32>
    tpu.vector_store %arg7[%265, %c0_62], %264 {strides = array<i32>} : memref<8x128xf32, #tpu.memory_space<vmem>>, vector<1x128xf32>,
    %c7_i32 = arith.constant 7 : i32
    %267 = arith.index_cast %c7_i32 : i32 to index
    %c0_63 = arith.constant 0 : index
    %268 = vector.load %arg9[%267, %c0_63] : memref<8x384xf32, #tpu.memory_space<vmem>>, vector<1x384xf32>
    %269 = arith.truncf %264 : vector<1x128xf32> to vector<1x128xbf16>
    %cst_64 = arith.constant dense<0.000000e+00> : vector<1x384xf32>
    %270 = tpu.matmul %269, %11, %cst_64 {dimension_numbers = #tpu.dot_dimension_numbers<[1], [0], [0], [1], [0, 0, 1, 1], [], []>} : vector<1x128xbf16>, vector<128x384xbf16>, vector<1x384xf32> -> vector<1x384xf32>
    %271 = vector.extract_strided_slice %268 {offsets = [0, 0], sizes = [1, 128], strides = [1, 1]} : vector<1x384xf32> to vector<1x128xf32>
    %272 = vector.extract_strided_slice %270 {offsets = [0, 0], sizes = [1, 128], strides = [1, 1]} : vector<1x384xf32> to vector<1x128xf32>
    %273 = arith.addf %271, %272 : vector<1x128xf32>
    %274 = arith.negf %273 : vector<1x128xf32>
    %275 = math.exp %274 : vector<1x128xf32>
    %cst_65 = arith.constant 1.000000e+00 : f32
    %276 = vector.broadcast %cst_65 : f32 to vector<1x128xf32>
    %277 = arith.addf %276, %275 : vector<1x128xf32>
    %278 = arith.divf %276, %277 : vector<1x128xf32>
    %279 = vector.extract_strided_slice %268 {offsets = [0, 128], sizes = [1, 128], strides = [1, 1]} : vector<1x384xf32> to vector<1x128xf32>
    %280 = vector.extract_strided_slice %270 {offsets = [0, 128], sizes = [1, 128], strides = [1, 1]} : vector<1x384xf32> to vector<1x128xf32>
    %281 = arith.addf %279, %280 : vector<1x128xf32>
    %282 = arith.negf %281 : vector<1x128xf32>
    %283 = math.exp %282 : vector<1x128xf32>
    %cst_66 = arith.constant 1.000000e+00 : f32
    %284 = vector.broadcast %cst_66 : f32 to vector<1x128xf32>
    %285 = arith.addf %284, %283 : vector<1x128xf32>
    %286 = arith.divf %284, %285 : vector<1x128xf32>
    %287 = vector.extract_strided_slice %268 {offsets = [0, 256], sizes = [1, 128], strides = [1, 1]} : vector<1x384xf32> to vector<1x128xf32>
    %288 = vector.extract_strided_slice %270 {offsets = [0, 256], sizes = [1, 128], strides = [1, 1]} : vector<1x384xf32> to vector<1x128xf32>
    %289 = arith.addf %288, %12 : vector<1x128xf32>
    %290 = arith.mulf %278, %289 : vector<1x128xf32>
    %291 = arith.addf %287, %290 : vector<1x128xf32>
    %292 = math.tanh %291 : vector<1x128xf32>
    %cst_67 = arith.constant 1.000000e+00 : f32
    %293 = vector.broadcast %cst_67 : f32 to vector<1x128xf32>
    %294 = arith.subf %293, %286 : vector<1x128xf32>
    %295 = arith.mulf %294, %292 : vector<1x128xf32>
    %296 = arith.mulf %286, %264 : vector<1x128xf32>
    %297 = arith.addf %295, %296 : vector<1x128xf32>
    %298 = arith.addi %13, %c7_i32 : i32
    %c12_i32_68 = arith.constant 12 : i32
    %299 = arith.cmpi slt, %298, %c12_i32_68 : i32
    %300 = arith.select %299, %297, %264 : vector<1x128xf32>
    %301 = arith.index_cast %c7_i32 : i32 to index
    %c0_69 = arith.constant 0 : index
    %302 = vector.load %arg7[%301, %c0_69] : memref<8x128xf32, #tpu.memory_space<vmem>>, vector<1x128xf32>
    tpu.vector_store %arg7[%301, %c0_69], %300 {strides = array<i32>} : memref<8x128xf32, #tpu.memory_space<vmem>>, vector<1x128xf32>,
    %c8_i32_70 = arith.constant 8 : i32
    %c0_71 = arith.constant 0 : index
    %c0_72 = arith.constant 0 : index
    %303 = vector.load %arg10[%c0_71, %c0_72] : memref<1x128xf32, #tpu.memory_space<vmem>>, vector<1x128xf32>
    tpu.vector_store %arg10[%c0_71, %c0_72], %300 {strides = array<i32>} : memref<1x128xf32, #tpu.memory_space<vmem>>, vector<1x128xf32>,
    %c1_i32_73 = arith.constant 1 : i32
    %304 = arith.cmpi eq, %arg0, %c1_i32_73 : i32
    %305 = arith.extui %304 : i1 to i32
    %c0_i32_74 = arith.constant 0 : i32
    %306 = arith.cmpi ne, %305, %c0_i32_74 : i32
    scf.if %306 {
      %c0_75 = arith.constant 0 : index
      %c0_76 = arith.constant 0 : index
      %307 = vector.load %arg8[%c0_75, %c0_76] : memref<1x128xf32, #tpu.memory_space<vmem>>, vector<1x128xf32>
      tpu.vector_store %arg8[%c0_75, %c0_76], %300 {strides = array<i32>} : memref<1x128xf32, #tpu.memory_space<vmem>>, vector<1x128xf32>,
    } else {
    }
    return
  }
  func.func @transform_0(%arg0: i32) -> (i32, i32) {
    %c0_i32 = arith.constant 0 : i32
    %c0_i32_0 = arith.constant 0 : i32
    return %arg0, %c0_i32 : i32, i32
  }
  func.func @transform_1(%arg0: i32) -> (i32, i32) {
    %c0_i32 = arith.constant 0 : i32
    %c0_i32_0 = arith.constant 0 : i32
    %c0_i32_1 = arith.constant 0 : i32
    return %c0_i32, %c0_i32_0 : i32, i32
  }
  func.func @transform_2(%arg0: i32) -> (i32, i32) {
    %c0_i32 = arith.constant 0 : i32
    %c0_i32_0 = arith.constant 0 : i32
    %c0_i32_1 = arith.constant 0 : i32
    return %c0_i32, %c0_i32_0 : i32, i32
  }
  func.func @transform_3(%arg0: i32) -> (i32, i32) {
    %c0_i32 = arith.constant 0 : i32
    %c0_i32_0 = arith.constant 0 : i32
    %c0_i32_1 = arith.constant 0 : i32
    return %c0_i32, %c0_i32_0 : i32, i32
  }
  func.func @transform_4(%arg0: i32) -> (i32, i32) {
    %c0_i32 = arith.constant 0 : i32
    %c0_i32_0 = arith.constant 0 : i32
    %c0_i32_1 = arith.constant 0 : i32
    return %c0_i32, %c0_i32_0 : i32, i32
  }
  func.func @transform_5(%arg0: i32) -> (i32, i32) {
    %c0_i32 = arith.constant 0 : i32
    %c0_i32_0 = arith.constant 0 : i32
    %c0_i32_1 = arith.constant 0 : i32
    return %c0_i32, %c0_i32_0 : i32, i32
  }
  func.func @transform_6(%arg0: i32) -> (i32, i32) {
    %c0_i32 = arith.constant 0 : i32
    %c0_i32_0 = arith.constant 0 : i32
    return %arg0, %c0_i32 : i32, i32
  }
  func.func @transform_7(%arg0: i32) -> (i32, i32) {
    %c0_i32 = arith.constant 0 : i32
    %c0_i32_0 = arith.constant 0 : i32
    %c0_i32_1 = arith.constant 0 : i32
    return %c0_i32, %c0_i32_0 : i32, i32
  }
}

</mosaic_0001>

<bundles_post_ra>
// kernel: tpu_custom_call.1
= control target key start
LH: loop header
LB: loop body
LE: loop exit
PB: predicated region body
PF: predicated region fallthrough
CT: control target
= control target key end

     0   :  { %13 = vsyncpa [#allocation5], 0  ;;  %s3318_s0 = inlined_call_operand.hbm [shape: f32[16,128], index: 0, kind: input, shape index: {}]   ;;  %s3319_s1 = inlined_call_operand.hbm [shape: bf16[128,384], index: 1, kind: input, shape index: {}]   ;;  %s3320_s2 = inlined_call_operand.hbm [shape: bf16[128,384], index: 2, kind: input, shape index: {}]   ;;  %s3321_s3 = inlined_call_operand.vmem [shape: f32[1,384], index: 3, kind: input, shape index: {}]   ;;  %s3322_s4 = inlined_call_operand.vmem [shape: f32[1,128], index: 4, kind: input, shape index: {}]   ;;  %s3323_s5 = inlined_call_operand.vmem [shape: f32[1,128], index: 5, kind: input, shape index: {}]   ;;  %s3324_s6 = inlined_call_operand.hbm [shape: f32[16,128], index: 6, kind: output, shape index: {0}]   ;;  %s3325_s7 = inlined_call_operand.hbm [shape: f32[1,128], index: 7, kind: output, shape index: {1}]  }
   0x1   :  { %15 = vsyncpa [#allocation5 + $0x1], 0 }
   0x2   :  { %16 = vsyncpa [#allocation8], 0 }
   0x3   :  { %17 = vsyncpa [#allocation6], 0 }
   0x4   :  { %19 = vsyncpa [#allocation6 + $0x1], 0 }
   0x5   :  { %20 = vsyncpa [#allocation12], 0  ;;  %s2660_s24 = smov 0   ;;  %s2662_s25 = smov 0  }
   0x6   :  { %s2664_s26 = smov 0   ;;  %s2666_s27 = smov 0  }
   0x7 LB: > { %s2681_s28 = sadd.s32 4294967295, %s2608_s27   ;;  %s1828_s29 = sadd.s32 4294967294, %s2608_s27   ;;  %s2608_s27 = sphi %s2666_s27, %s3350_s27   ;;  %s2604_s26 = sphi %s2664_s26, %s3349_s26   ;;  %s2600_s25 = sphi %s2662_s25, %s3348_s25   ;;  %s2596_s24 = sphi %s2660_s24, %s3347_s24  }
   0x8   : > { %p46_p0 = scmp.ne.s32.totalorder %s2600_s25, %s2596_s24  ;;  %p3326_p1 = scmp.eq.s32.totalorder %s2681_s28, 0 }
   0x9   : > { %p181_p3 = scmp.eq.s32.totalorder %s1828_s29, 1  ;;  %p1829_p5 = scmp.ge.s32.totalorder %s2608_s27, 1 }
   0xa   : > { %p2690_p4 = por %p3326_p1, %p46_p0  ;;  %p209_p7 = scmp.lt.s32.totalorder %s2608_s27, 3 }
   0xb   : > { %p2695_p6 = por %p181_p3, %p46_p0  ;;  %s2610_s10 = smov [#allocation7]  }
   0xc   : > { %s3329_s30 = scalar_select %p2690_p4, 1, 0 }
   0xd   : > { %s3330_s8 = scalar_select %p2695_p6, 1, 0 }
   0xe   : > { %p2701_p9 = pnand %p1829_p5, %p209_p7  ;;  %s221_s11 = sshll.u32 %s2610_s10, 4  ;;  %s2705_s11 = int_to_ptr.vmem [resolvable:$true] %s221_s11 }
   0xf   : > { %s2611_s13 = smov [#allocation9]   ;;  %s2422_s17 = scalar_lea.hbm %s3319_s1, 3072 }
  0x10   : > { %p2190_p10 = pneg %p2701_p9  ;;  %s234_s14 = sshll.u32 %s2611_s13, 4  ;;  %s2716_s14 = int_to_ptr.vmem [resolvable:$true] %s234_s14 }
  0x11   : > { %p2423_p13 = scmp.ne.s32.totalorder %s3319_s1, %s2422_s17  ;;  %p2429_p7 = scmp.lt.u32.totalorder %s2422_s17, %s3319_s1 }
  0x12   : > { %p2712_p12 = pnand %p2190_p10, %p3326_p1 }
  0x14   : > { %p2424_p0 = pneg %p2712_p12 }
  0x16   : > { %p2425_p3 = pnand %p2424_p0, %p2423_p13 }
  0x18   : > { %p2426_p5 = pneg %p2425_p3 }
  0x1a   : > { %p2431_p10 = pnand %p2429_p7, %p2426_p5 }
  0x1c   : > { %2434 = shalt.err (!%p2431_p10)
}
  0x1d   : > { %s2435_s22 = scalar_lea.vmem %s2705_s11, 3072  ;;  %p2443_p2 = scmp.lt.s32.totalorder %s2705_s11, %s2705_s11 }
  0x1e   : > { %p2436_p11 = scmp.ne.s32.totalorder %s2705_s11, %s2435_s22  ;;  %p2444_p13 = scmp.lt.s32.totalorder %s2435_s22, %s2435_s22 }
  0x20   : > { %p2438_p8 = pnand %p2436_p11, %p2424_p0  ;;  %p2445_p3 = por %p2444_p13, %p2443_p2 }
  0x22   : > { %p2439_p1 = pneg %p2438_p8 }
  0x24   : > { %p2446_p6 = pnand %p2445_p3, %p2439_p1 }
  0x26   : > { %2449 = shalt.err (!%p2446_p6)
}
  0x27   : > { %s2612_s23 = smov 192   ;;  %s2613_s29 = smov 12  }
  0x28   : > { %2193 = dma.hbm_to_vmem [thread:$0]  (!%p2712_p12), %s3319_s1, 3072, %s2705_s11, [#allocation8], %s2612_s23, %s2612_s23, %s2613_s29  }
  0x29   : > { %s2450_s17 = scalar_lea.hbm %s3320_s2, 3072 }
  0x2a   : > { %p2451_p2 = scmp.ne.s32.totalorder %s3320_s2, %s2450_s17  ;;  %p2457_p8 = scmp.lt.u32.totalorder %s2450_s17, %s3320_s2 }
  0x2c   : > { %p2453_p1 = pnand %p2451_p2, %p2424_p0 }
  0x2e   : > { %p2454_p6 = pneg %p2453_p1 }
  0x30   : > { %p2459_p11 = pnand %p2457_p8, %p2454_p6 }
  0x32   : > { %2462 = shalt.err (!%p2459_p11)
}
  0x33   : > { %s2463_s11 = scalar_lea.vmem %s2716_s14, 3072  ;;  %p2471_p13 = scmp.lt.s32.totalorder %s2716_s14, %s2716_s14 }
  0x34   : > { %p2464_p5 = scmp.ne.s32.totalorder %s2716_s14, %s2463_s11  ;;  %p2472_p3 = scmp.lt.s32.totalorder %s2463_s11, %s2463_s11 }
  0x36   : > { %p2466_p7 = pnand %p2464_p5, %p2424_p0  ;;  %p2473_p2 = por %p2472_p3, %p2471_p13 }
  0x38   : > { %p2467_p10 = pneg %p2466_p7 }
  0x3a   : > { %p2474_p1 = pnand %p2473_p2, %p2467_p10 }
  0x3c   : > { %2477 = shalt.err (!%p2474_p1)
}
  0x3d   : > { %2196 = dma.hbm_to_vmem [thread:$0]  (!%p2712_p12), %s3320_s2, 3072, %s2716_s14, [#allocation8], %s2612_s23, %s2612_s23, %s2613_s29  }
  0x3e   : > { %s2771_s13 = sadd.s32 1, %s2608_s27   ;;  %s33_s12 = sadd.s32 1, %s2604_s26 }
  0x3f   : > { %s30_s15 = ssub.s32 %s2608_s27, %s2771_s13  ;;  %p40_p0 = scmp.ne.s32.totalorder %s2604_s26, %s2600_s25 }
  0x40   : > { %p31_p6 = scmp.eq.s32.totalorder %s30_s15, 0  ;;  %p41_p8 = scmp.eq.s32.totalorder %s2608_s27, 0 }
  0x41   : > { %p3333_p11 = scmp.eq.s32.totalorder %s2681_s28, 1  ;;  %p2207_p7 = scmp.lt.s32.totalorder %s2608_s27, 2 }
  0x42   : > { %s2787_s17 = scalar_select %p31_p6, %s2604_s26, %s33_s12  }
  0x43   : > { %p2781_p5 = por %p3333_p11, %p40_p0  ;;  %p42_p10 = por %p41_p8, %p40_p0 }
  0x44   : > { %s257_s18 = sand.u32 1, %s2604_s26   ;;  %s1834_s14 = sshll.u32 %s2608_s27, 7 }
  0x45   : > { %s3334_s16 = scalar_select %p2781_p5, 1, 0 }
  0x46   : > { %s1833_s19 = sshll.u32 %s257_s18, 3  ;;  %s2794_s20 = scalar_lea.hbm %s3318_s0, %s1834_s14 }
  0x47   : > { %s261_s21 = scalar_lea.vmem [#allocation4], %s1833_s19  ;;  %p2798_p12 = pnand %p2207_p7, %p42_p10 }
  0x48   : > { %s268_s11 = sshll.u32 %s261_s21, 4  ;;  %s258_s10 = scalar_lea.sflag [#allocation5], %s257_s18  ;;  %s2796_s11 = int_to_ptr.vmem [resolvable:$true] %s268_s11 }
  0x49   : > { %s2478_s12 = scalar_lea.hbm %s2794_s20, 128  ;;  %p2480_p3 = pneg %p2798_p12 }
  0x4a   : > { %p2479_p13 = scmp.ne.s32.totalorder %s2794_s20, %s2478_s12  ;;  %s2483_s14 = scalar_lea.hbm %s3318_s0, 256 }
  0x4b   : > { %p2484_p0 = scmp.lt.u32.totalorder %s2794_s20, %s3318_s0  ;;  %p2485_p6 = scmp.lt.u32.totalorder %s2483_s14, %s2478_s12 }
  0x4c   : > { %p2481_p2 = pnand %p2480_p3, %p2479_p13  ;;  %p2487_p11 = scmp.lt.u32.totalorder %s2478_s12, %s2794_s20 }
  0x4d   : > { %p2486_p8 = por %p2485_p6, %p2484_p0 }
  0x4e   : > { %p2482_p1 = pneg %p2481_p2 }
  0x4f   : > { %p2488_p7 = por %p2487_p11, %p2486_p8 }
  0x51   : > { %p2489_p10 = pnand %p2488_p7, %p2482_p1 }
  0x53   : > { %2492 = shalt.err (!%p2489_p10)
}
  0x54   : > { %s2493_s18 = scalar_lea.vmem %s2796_s11, 128  ;;  %s2614_s21 = smov [#allocation4]  }
  0x55   : > { %p2494_p13 = scmp.ne.s32.totalorder %s2796_s11, %s2493_s18  ;;  %s2498_s15 = sshll.u32 %s2614_s21, 4  ;;  %s2499_s15 = int_to_ptr.vmem [resolvable:$false] %s2498_s15 }
  0x56   : > { %s2500_s19 = scalar_lea.vmem %s2499_s15, 256  ;;  %p2501_p4 = scmp.lt.s32.totalorder %s2796_s11, %s2499_s15 }
  0x57   : > { %p2496_p2 = pnand %p2494_p13, %p2480_p3  ;;  %p2502_p0 = scmp.lt.s32.totalorder %s2500_s19, %s2493_s18 }
  0x59   : > { %p2497_p5 = pneg %p2496_p2  ;;  %p2503_p6 = por %p2502_p0, %p2501_p4 }
  0x5b   : > { %p2504_p8 = pnand %p2503_p6, %p2497_p5 }
  0x5d   : > { %2507 = shalt.err (!%p2504_p8)
}
  0x5e   : > { %2200 = dma.hbm_to_vmem [thread:$0]  (!%p2798_p12), %s2794_s20, 128, %s2796_s11, %s258_s10  }
  0x5f   : > { %277 = sbr.rel (%p2701_p9) target bundleno = 2330 (0x91a), region = 44  ;;  %s2830_s12 = sand.u32 (!%p2701_p9), 1, %s2600_s25  }
  0x60   : > { %s1836_s14 = sshll.u32 (!%p2701_p9), %s2830_s12, 3  ;;  %s280_s23 = scalar_lea.sflag (!%p2701_p9), [#allocation5], %s2830_s12 }
  0x61   : > { %s2834_s29 = scalar_lea.vmem (!%p2701_p9), [#allocation4], %s1836_s14  ;;  %p3336_p4 = scmp.ne.s32.totalorder (!%p2701_p9), %s3329_s30, 0 }
  0x66   : > { %2579 = dma.done.wait (%p3336_p4), %s280_s23, 128  }
  0x67   : > { %2581 = vsyncadd (%p3336_p4), %s280_s23, 4294967168  ;;  %p3337_p5 = scmp.eq.s32.totalorder %s2681_s28, 0 }
  0x69   : > { %2583 = dma.done.wait (%p3337_p5), [#allocation8], 6144   ;;  %p3338_p9 = pmov %p3337_p5 }
  0x6a   : > { %s2844_s9 = scalar_lea.vmem [#allocation10], %s1836_s14  ;;  %p3339_p12 = scmp.ne.s32.totalorder %s2681_s28, 0 }
  0x6b   : > { %2585 = vsyncadd (%p3338_p9), [#allocation8], 4294961152  ;;  %v327_v0 = vld [vmem:[%s3323_s5] sm:$0x1] (!%p3339_p12) }
  0x6c   : > { %326 = sbr.rel (%p3339_p12) target bundleno = 115 (0x73), region = 60  ;;  %328 = vst [vmem:[#allocation3] sm:$0x1] (!%p3339_p12), %v327_v0 }
  0x73 PF: > { %v2253_v1 = vld [vmem:[#allocation7 + $0x4] ss:$12 sps:$4 sm:$0xff]   ;;  %v2255_v2 = vld [vmem:[#allocation7] ss:$12 sps:$4 sm:$0xff]   ;;  %v2615_v3 = vmov 0.0   ;;  %v2616_v4 = vmov 0   ;;  %v365_v55 = vlaneseq }
  0x74   : > { %1994 = vmatprep.subr.bf16.mxu1 %v2615_v3  ;;  %540 = vmatprep.mubr.bf16.mxu0 %v2616_v4  ;;  %v2256_v5 = vld [vmem:[#allocation7 + $0x8] ss:$12 sps:$4 sm:$0xff]   ;;  %v2259_v7 = vld [vmem:[#allocation7 + $0x18] ss:$12 sps:$4 sm:$0xff]   ;;  %vm2617_vm0 = vmmov 0   ;;  %s2997_s21 = sshll.u32 %s2681_s28, 3 }
  0x75   : > { %508 = vmatprep.subr.bf16.mxu0 %v2253_v1  ;;  %v2257_v6 = vld [vmem:[#allocation7 + $0x1c] ss:$12 sps:$4 sm:$0xff]   ;;  %2010 = vmatprep.mubr.msk.bf16.mxu1 %vm2617_vm0, %v2615_v3  ;;  %v2260_v8 = vld [vmem:[#allocation7 + $0x20] ss:$12 sps:$4 sm:$0xff]   ;;  %v2264_v11 = vld [vmem:[#allocation7 + $0x38] ss:$12 sps:$4 sm:$0xff]  }
  0x76   : > { %509 = vmatpush1.bf16.msra.mxu0 %v2255_v2  ;;  %1995 = vmatpush3.bf16.msra.mxu1 %v2256_v5  ;;  %v2261_v9 = vld [vmem:[#allocation7 + $0x34] ss:$12 sps:$4 sm:$0xff]   ;;  %v2263_v10 = vld [vmem:[#allocation7 + $0x30] ss:$12 sps:$4 sm:$0xff]   ;;  %v2265_v12 = vld [vmem:[#allocation7 + $0x4c] ss:$12 sps:$4 sm:$0xff]  }
  0x77   : > { %510 = vmatprep.subr.bf16.mxu0 %v2257_v6  ;;  %1996 = vmatprep.subr.bf16.mxu1 %v2615_v3  ;;  %v2267_v13 = vld [vmem:[#allocation7 + $0x48] ss:$12 sps:$4 sm:$0xff]   ;;  %v2268_v14 = vld [vmem:[#allocation7 + $0x50] ss:$12 sps:$4 sm:$0xff]   ;;  %v2271_v16 = vld [vmem:[#allocation7 + $0x60] ss:$12 sps:$4 sm:$0xff]  }
  0x78   : > { %v2269_v15 = vld [vmem:[#allocation7 + $0x64] ss:$12 sps:$4 sm:$0xff]   ;;  %v2272_v17 = vld [vmem:[#allocation7 + $0x68] ss:$12 sps:$4 sm:$0xff]   ;;  %v2276_v20 = vld [vmem:[#allocation7 + $0x80] ss:$12 sps:$4 sm:$0xff]  }
  0x79   : > { %v2273_v18 = vld [vmem:[#allocation7 + $0x7c] ss:$12 sps:$4 sm:$0xff]   ;;  %v2275_v19 = vld [vmem:[#allocation7 + $0x78] ss:$12 sps:$4 sm:$0xff]   ;;  %v2277_v21 = vld [vmem:[#allocation7 + $0x94] ss:$12 sps:$4 sm:$0xff]  }
  0x7a   : > { %511 = vmatpush1.bf16.msra.mxu0 %v2259_v7  ;;  %1997 = vmatpush3.bf16.msra.mxu1 %v2260_v8  ;;  %v2279_v22 = vld [vmem:[#allocation7 + $0x90] ss:$12 sps:$4 sm:$0xff]   ;;  %v2280_v23 = vld [vmem:[#allocation7 + $0x98] ss:$12 sps:$4 sm:$0xff]   ;;  %v2283_v25 = vld [vmem:[#allocation7 + $0xa8] ss:$12 sps:$4 sm:$0xff]  }
  0x7b   : > { %512 = vmatprep.subr.bf16.mxu0 %v2261_v9  ;;  %1998 = vmatprep.subr.bf16.mxu1 %v2615_v3  ;;  %v2281_v24 = vld [vmem:[#allocation7 + $0xac] ss:$12 sps:$4 sm:$0xff]   ;;  %v2284_v26 = vld [vmem:[#allocation7 + $0xb0] ss:$12 sps:$4 sm:$0xff]   ;;  %v2870_v32 = vld [vmem:[#allocation9 + $0x8] ss:$12 sps:$4 sm:$0xff]  }
  0x7c   : > { %v329_v27 = vld [vmem:[%s2834_s29] sm:$0xff]  ;;  %v2865_v30 = vld [vmem:[#allocation9] ss:$12 sps:$4 sm:$0xff]   ;;  %v366_v56 = vshrl.u32 %v365_v55, 7  ;;  %p865_p3 = scmp.lt.s32.totalorder %s2997_s21, 12  ;;  %s982_s19 = sadd.s32 1, %s2997_s21 }
  0x7d   : > { %v2862_v28 = vld [vmem:[#allocation9 + $0x4] ss:$12 sps:$4 sm:$0xff]   ;;  %v330_v29 = vpack.c.bf16 %v329_v27, %v329_v27  ;;  %v2867_v31 = vld [vmem:[#allocation9 + $0x1c] ss:$12 sps:$4 sm:$0xff]   ;;  %v2876_v34 = vld [vmem:[#allocation9 + $0x34] ss:$12 sps:$4 sm:$0xff]  }
  0x7e   : > { %513 = vmatpush1.bf16.msra.mxu0 %v2263_v10  ;;  %1999 = vmatpush3.bf16.msra.mxu1 %v2264_v11  ;;  %v2873_v33 = vld [vmem:[#allocation9 + $0x18] ss:$12 sps:$4 sm:$0xff]   ;;  %v2880_v35 = vld [vmem:[#allocation9 + $0x20] ss:$12 sps:$4 sm:$0xff]   ;;  %v2887_v36 = vld [vmem:[#allocation9 + $0x30] ss:$12 sps:$4 sm:$0xff]  }
  0x7f   : > { %514 = vmatprep.subr.bf16.mxu0 %v2265_v12  ;;  %2000 = vmatprep.subr.bf16.mxu1 %v2615_v3  ;;  %v2890_v37 = vld [vmem:[#allocation9 + $0x4c] ss:$12 sps:$4 sm:$0xff]   ;;  %v2897_v39 = vld [vmem:[#allocation9 + $0x48] ss:$12 sps:$4 sm:$0xff]   ;;  %v2900_v40 = vld [vmem:[#allocation9 + $0x64] ss:$12 sps:$4 sm:$0xff]  }
  0x80   : > { %v2893_v38 = vld [vmem:[#allocation9 + $0x38] ss:$12 sps:$4 sm:$0xff]   ;;  %v2903_v41 = vld [vmem:[#allocation9 + $0x50] ss:$12 sps:$4 sm:$0xff]   ;;  %v2907_v42 = vld [vmem:[#allocation9 + $0x60] ss:$12 sps:$4 sm:$0xff]  }
  0x81   : > { %v2910_v43 = vld [vmem:[#allocation9 + $0x7c] ss:$12 sps:$4 sm:$0xff]   ;;  %v2917_v45 = vld [vmem:[#allocation9 + $0x78] ss:$12 sps:$4 sm:$0xff]   ;;  %v2920_v46 = vld [vmem:[#allocation9 + $0x94] ss:$12 sps:$4 sm:$0xff]  }
  0x82   : > { %515 = vmatpush1.bf16.msra.mxu0 %v2267_v13  ;;  %2001 = vmatpush3.bf16.msra.mxu1 %v2268_v14  ;;  %v2913_v44 = vld [vmem:[#allocation9 + $0x68] ss:$12 sps:$4 sm:$0xff]   ;;  %v2923_v47 = vld [vmem:[#allocation9 + $0x80] ss:$12 sps:$4 sm:$0xff]   ;;  %v2927_v48 = vld [vmem:[#allocation9 + $0x90] ss:$12 sps:$4 sm:$0xff]  }
  0x83   : > { %516 = vmatprep.subr.bf16.mxu0 %v2269_v15  ;;  %2002 = vmatprep.subr.bf16.mxu1 %v2615_v3  ;;  %v2930_v49 = vld [vmem:[#allocation9 + $0xac] ss:$12 sps:$4 sm:$0xff]   ;;  %v2937_v51 = vld [vmem:[#allocation9 + $0xa8] ss:$12 sps:$4 sm:$0xff]   ;;  %v2943_v53 = vld [vmem:[#allocation9 + $0xb0] ss:$12 sps:$4 sm:$0xff]  }
  0x84   : > { %v2933_v50 = vld [vmem:[#allocation9 + $0x98] ss:$12 sps:$4 sm:$0xff]   ;;  %v2939_v52 = vld [vmem:[#allocation3] sm:$0x1]  ;;  %v367_v57 = vsub.s32 0, %v366_v56  ;;  %v371_v59 = vsub.s32 1, %v366_v56 }
  0x85   : > { %v628_v54 = vpack.c.bf16 %v2939_v52, %v2939_v52  ;;  %v363_v58 = vld [vmem:[%s3321_s3] sm:$0x7]  ;;  %v375_v60 = vsub.s32 2, %v366_v56  ;;  %s866_s15 = scalar_select %p865_p3, 1, 0 }
  0x86   : > { %517 = vmatpush1.bf16.msra.mxu0 %v2271_v16  ;;  %2003 = vmatpush3.bf16.msra.mxu1 %v2272_v17  ;;  %v368_v61 = vrot.slane %v363_v58, %v367_v57  ;;  %v372_v62 = vrot.slane %v363_v58, %v371_v59  ;;  %v2993_v55 = vld [vmem:[%s3322_s4] sm:$0x1]  ;;  %p983_p1 = scmp.lt.s32.totalorder %s982_s19, 12  ;;  %s1100_s23 = sadd.s32 2, %s2997_s21 }
  0x87   : > { %518 = vmatprep.subr.bf16.mxu0 %v2273_v18  ;;  %2004 = vmatprep.subr.bf16.mxu1 %v2615_v3  ;;  %v376_v63 = vrot.slane %v363_v58, %v375_v60  ;;  %p1101_p11 = scmp.lt.s32.totalorder %s1100_s23, 12  ;;  %s1218_s20 = sadd.s32 3, %s2997_s21 }
  0x88   : > { %s984_s14 = scalar_select %p983_p1, 1, 0 }
  0x89   : > { %s1102_s29 = scalar_select %p1101_p11, 1, 0 }
  0x8a   : > { %519 = vmatpush1.bf16.msra.mxu0 %v2275_v19  ;;  %2005 = vmatpush3.bf16.msra.mxu1 %v2276_v20  ;;  %p1219_p7 = scmp.lt.s32.totalorder %s1218_s20, 12  ;;  %s1336_s30 = sadd.s32 4, %s2997_s21 }
  0x8b   : > { %520 = vmatprep.subr.bf16.mxu0 %v2277_v21  ;;  %2006 = vmatprep.subr.bf16.mxu1 %v2615_v3  ;;  %p1337_p10 = scmp.lt.s32.totalorder %s1336_s30, 12  ;;  %s1454_s10 = sadd.s32 5, %s2997_s21 }
  0x8c   : > { %s1220_s11 = scalar_select %p1219_p7, 1, 0 }
  0x8d   : > { %s1338_s22 = scalar_select %p1337_p10, 1, 0 }
  0x8e   : > { %521 = vmatpush1.bf16.msra.mxu0 %v2279_v22  ;;  %2007 = vmatpush3.bf16.msra.mxu1 %v2280_v23  ;;  %p1455_p13 = scmp.lt.s32.totalorder %s1454_s10, 12  ;;  %p1906_p6 = scmp.ne.s32.totalorder %s2681_s28, 1 }
  0x8f   : > { %522 = vmatprep.subr.bf16.mxu0 %v2281_v24  ;;  %2008 = vmatprep.subr.bf16.mxu1 %v2615_v3 }
  0x90   : > { %s1456_s18 = scalar_select %p1455_p13, 1, 0 }
  0x92   : > { %523 = vmatpush1.bf16.msra.mxu0 %v2283_v25  ;;  %2009 = vmatpush3.bf16.msra.mxu1 %v2284_v26 }
  0x93   : > { %757 = vmatprep.subr.bf16.mxu0 %v2862_v28  ;;  %2014 = vmatprep.subr.bf16.mxu1 %v2615_v3 }
  0x95   : > { %541 = vmatmul.mubr.bf16.vlgmr.msra.gmra.mrb[0].mxu0 %v330_v29  ;;  %2011 = vmatmul.mubr.bf16.vlgmr.msra.gmra.mrb[0].mxu1 %v330_v29 }
  0x96   : > { %758 = vmatpush1.bf16.msra.mxu0 %v2865_v30  ;;  %2015 = vmatpush3.bf16.msra.mxu1 %v2870_v32 }
  0x97   : > { %759 = vmatprep.subr.bf16.mxu0 %v2867_v31  ;;  %2016 = vmatprep.subr.bf16.mxu1 %v2615_v3 }
  0x98   : > { %789 = vmatprep.mubr.bf16.mxu0 %v2616_v4  ;;  %2030 = vmatprep.mubr.msk.bf16.mxu1 %vm2617_vm0, %v2615_v3 }
  0x9a   : > { %760 = vmatpush1.bf16.msra.mxu0 %v2873_v33  ;;  %2017 = vmatpush3.bf16.msra.mxu1 %v2880_v35 }
  0x9b   : > { %761 = vmatprep.subr.bf16.mxu0 %v2876_v34  ;;  %2018 = vmatprep.subr.bf16.mxu1 %v2615_v3 }
  0x9e   : > { %762 = vmatpush1.bf16.msra.mxu0 %v2887_v36  ;;  %2019 = vmatpush3.bf16.msra.mxu1 %v2893_v38 }
  0x9f   : > { %763 = vmatprep.subr.bf16.mxu0 %v2890_v37  ;;  %2020 = vmatprep.subr.bf16.mxu1 %v2615_v3 }
  0xa2   : > { %764 = vmatpush1.bf16.msra.mxu0 %v2897_v39  ;;  %2021 = vmatpush3.bf16.msra.mxu1 %v2903_v41 }
  0xa3   : > { %765 = vmatprep.subr.bf16.mxu0 %v2900_v40  ;;  %2022 = vmatprep.subr.bf16.mxu1 %v2615_v3 }
  0xa6   : > { %766 = vmatpush1.bf16.msra.mxu0 %v2907_v42  ;;  %2023 = vmatpush3.bf16.msra.mxu1 %v2913_v44 }
  0xa7   : > { %767 = vmatprep.subr.bf16.mxu0 %v2910_v43  ;;  %2024 = vmatprep.subr.bf16.mxu1 %v2615_v3 }
  0xaa   : > { %768 = vmatpush1.bf16.msra.mxu0 %v2917_v45  ;;  %2025 = vmatpush3.bf16.msra.mxu1 %v2923_v47 }
  0xab   : > { %769 = vmatprep.subr.bf16.mxu0 %v2920_v46  ;;  %2026 = vmatprep.subr.bf16.mxu1 %v2615_v3 }
  0xae   : > { %770 = vmatpush1.bf16.msra.mxu0 %v2927_v48  ;;  %2027 = vmatpush3.bf16.msra.mxu1 %v2933_v50 }
  0xaf   : > { %771 = vmatprep.subr.bf16.mxu0 %v2930_v49  ;;  %2028 = vmatprep.subr.bf16.mxu1 %v2615_v3 }
  0xb2   : > { %772 = vmatpush1.bf16.msra.mxu0 %v2937_v51  ;;  %2029 = vmatpush3.bf16.msra.mxu1 %v2943_v53 }
  0xb3   : > { %874 = vmatprep.subr.bf16.mxu0 %v2862_v28  ;;  %2034 = vmatprep.subr.bf16.mxu1 %v2615_v3 }
  0xb5   : > { %790 = vmatmul.mubr.bf16.vlgmr.msra.gmra.mrb[4].mxu0 %v628_v54  ;;  %2031 = vmatmul.mubr.bf16.vlgmr.msra.gmra.mrb[4].mxu1 %v628_v54 }
  0xb6   : > { %875 = vmatpush1.bf16.msra.mxu0 %v2865_v30  ;;  %2035 = vmatpush3.bf16.msra.mxu1 %v2870_v32 }
  0xb7   : > { %876 = vmatprep.subr.bf16.mxu0 %v2867_v31  ;;  %2036 = vmatprep.subr.bf16.mxu1 %v2615_v3 }
  0xb8   : > { %906 = vmatprep.mubr.bf16.mxu0 %v2616_v4  ;;  %2050 = vmatprep.mubr.msk.bf16.mxu1 %vm2617_vm0, %v2615_v3 }
  0xba   : > { %877 = vmatpush1.bf16.msra.mxu0 %v2873_v33  ;;  %2037 = vmatpush3.bf16.msra.mxu1 %v2880_v35 }
  0xbb   : > { %878 = vmatprep.subr.bf16.mxu0 %v2876_v34  ;;  %2038 = vmatprep.subr.bf16.mxu1 %v2615_v3 }
  0xbe   : > { %879 = vmatpush1.bf16.msra.mxu0 %v2887_v36  ;;  %2039 = vmatpush3.bf16.msra.mxu1 %v2893_v38 }
  0xbf   : > { %880 = vmatprep.subr.bf16.mxu0 %v2890_v37  ;;  %2040 = vmatprep.subr.bf16.mxu1 %v2615_v3 }
  0xc2   : > { %881 = vmatpush1.bf16.msra.mxu0 %v2897_v39  ;;  %2041 = vmatpush3.bf16.msra.mxu1 %v2903_v41 }
  0xc3   : > { %882 = vmatprep.subr.bf16.mxu0 %v2900_v40  ;;  %2042 = vmatprep.subr.bf16.mxu1 %v2615_v3 }
  0xc6   : > { %883 = vmatpush1.bf16.msra.mxu0 %v2907_v42  ;;  %2043 = vmatpush3.bf16.msra.mxu1 %v2913_v44 }
  0xc7   : > { %884 = vmatprep.subr.bf16.mxu0 %v2910_v43  ;;  %2044 = vmatprep.subr.bf16.mxu1 %v2615_v3 }
  0xca   : > { %885 = vmatpush1.bf16.msra.mxu0 %v2917_v45  ;;  %2045 = vmatpush3.bf16.msra.mxu1 %v2923_v47 }
  0xcb   : > { %886 = vmatprep.subr.bf16.mxu0 %v2920_v46  ;;  %2046 = vmatprep.subr.bf16.mxu1 %v2615_v3 }
  0xce   : > { %887 = vmatpush1.bf16.msra.mxu0 %v2927_v48  ;;  %2047 = vmatpush3.bf16.msra.mxu1 %v2933_v50 }
  0xcf   : > { %888 = vmatprep.subr.bf16.mxu0 %v2930_v49  ;;  %2048 = vmatprep.subr.bf16.mxu1 %v2615_v3 }
  0xd2   : > { %889 = vmatpush1.bf16.msra.mxu0 %v2937_v51  ;;  %2049 = vmatpush3.bf16.msra.mxu1 %v2943_v53 }
  0xd3   : > { %992 = vmatprep.subr.bf16.mxu0 %v2862_v28  ;;  %2054 = vmatprep.subr.bf16.mxu1 %v2615_v3 }
 0x168   : > { %v542_v0 = vpop.f32.mrb[0].mxu0  ;;  %v583_v5 = vpop.f32.mrb[0].mxu1 }
 0x169   : > { %v543_v1 = vadd.f32 %v542_v0, %v368_v61  ;;  %v544_v2 = vpop.f32.mrb[1].mxu0  ;;  %v584_v7 = vadd.f32 %v583_v5, %v376_v63  ;;  %v2012_v9 = vpop.f32.mrb[1].mxu1  ;;  %v867_v0 = vstv %s866_s15  ;;  %s1572_s15 = sadd.s32 6, %s2997_s21 }
 0x16a   : > { %v545_v6 = vadd.f32 %v544_v2, %v372_v62  ;;  %v546_v8 = vpop.f32.mrb[2].mxu0  ;;  %v586_v11 = vpop.f32.mrb[2].mxu1  ;;  %vm868_vm1 = vcmp.eq.s32.totalorder %v867_v0, 1  ;;  %p1573_p2 = scmp.lt.s32.totalorder %s1572_s15, 12 }
 0x16b   : > { %589 = vst [vmem:[#allocation2] sm:$0xff] %v543_v1  ;;  %v547_v10 = vpop.f32.mrb[3].mxu0  ;;  %591 = vst [vmem:[#allocation2 + $0x10] sm:$0xff] %v584_v7  ;;  %v2013_v12 = vpop.f32.mrb[3].mxu1 }
 0x16c   : > { %590 = vst [vmem:[#allocation2 + $0x8] sm:$0xff] %v545_v6  ;;  %s1574_s19 = scalar_select %p1573_p2, 1, 0 }
 0x173   : > { %v627_v13 = vld [vmem:[#allocation2] ss:$8 sm:$0x7] }
 0x174   : > { %v846_v18 = vrot.slane %v627_v13, 1  ;;  %v857_v59 = vrot.slane %v627_v13, 2 }
 0x188   : > { %v791_v14 = vpop.f32.mrb[4].mxu0  ;;  %v832_v17 = vpop.f32.mrb[4].mxu1 }
 0x189   : > { %v838_v15 = vadd.f32 %v791_v14, %v627_v13  ;;  %v793_v16 = vpop.f32.mrb[5].mxu0  ;;  %v2032_v20 = vpop.f32.mrb[5].mxu1  ;;  %v855_v57 = vadd.f32 %v832_v17, %v2993_v55 }
 0x18a   : > { %v795_v19 = vpop.f32.mrb[6].mxu0  ;;  %v835_v23 = vpop.f32.mrb[6].mxu1  ;;  %v848_v24 = vadd.f32 %v846_v18, %v793_v16 }
 0x18b   : > { %v1890_v21 = vmul.f32 -1.442695, %v838_v15  ;;  %v796_v22 = vpop.f32.mrb[7].mxu0  ;;  %v2033_v25 = vpop.f32.mrb[7].mxu1 }
 0x18c   : > { %v1891_v26 = vmul.f32 -1.442695, %v848_v24 }
 0x18d   : > { %2317 = vpow2.f32 %v1890_v21 }
 0x18e   : > { %2319 = vpow2.f32 %v1891_v26 }
 0x197   : > { %v2318_v27 = vpop.eup %2317 }
 0x198   : > { %v842_v29 = vadd.f32 1.0, %v2318_v27  ;;  %v2320_v54 = vpop.eup %2319 }
 0x199   : > { %v852_v56 = vadd.f32 1.0, %v2320_v54 }
 0x19a   : > { %2321 = vrcp.f32 %v842_v29 }
 0x19b   : > { %2323 = vrcp.f32 %v852_v56 }
 0x1a4   : > { %v2322_v58 = vpop.eup %2321 }
 0x1a5   : > { %v856_v60 = vmul.f32 %v2322_v58, %v855_v57  ;;  %v2324_v62 = vpop.eup %2323 }
 0x1a6   : > { %v861_v63 = vsub.f32 1.0, %v2324_v62  ;;  %v863_v2 = vmul.f32 %v2324_v62, %v2939_v52 }
 0x1a7   : > { %v859_v61 = vadd.f32 %v857_v59, %v856_v60  ;;  %v985_v59 = vstv %s984_s14 }
 0x1a8   : > { %vm986_vm2 = vcmp.eq.s32.totalorder %v985_v59, 1 }
 0x1a9   : > { %2325 = vtanh.f32 %v859_v61 }
 0x1b3   : > { %v2326_v1 = vpop.eup %2325 }
 0x1b4   : > { %v862_v5 = vmul.f32 %v2326_v1, %v861_v63 }
 0x1b6   : > { %v864_v6 = vadd.f32 %v863_v2, %v862_v5  ;;  %v990_v2 = vld [vmem:[#allocation2 + $0x2] ss:$8 sm:$0x7] }
 0x1b8   : > { %v3002_v7 = vsel %vm868_vm1, %v864_v6, %v2939_v52  ;;  %v872_v52 = vld [vmem:[#allocation2 + $0x1] ss:$8 sm:$0x7] }
 0x1b9   : > { %870 = vst [vmem:[%s2844_s9] sm:$0x1] %v3002_v7  ;;  %v873_v8 = vpack.c.bf16 %v3002_v7, %v3002_v7  ;;  %v963_v14 = vrot.slane %v872_v52, 1  ;;  %v974_v29 = vrot.slane %v872_v52, 2 }
 0x1bb   : > { %907 = vmatmul.mubr.bf16.vlgmr.msra.gmra.mrb[8].mxu0 %v873_v8  ;;  %2051 = vmatmul.mubr.bf16.vlgmr.msra.gmra.mrb[8].mxu1 %v873_v8 }
 0x1bc   : > { %993 = vmatpush1.bf16.msra.mxu0 %v2865_v30  ;;  %2055 = vmatpush3.bf16.msra.mxu1 %v2870_v32 }
 0x1bd   : > { %994 = vmatprep.subr.bf16.mxu0 %v2867_v31  ;;  %2056 = vmatprep.subr.bf16.mxu1 %v2615_v3 }
 0x1be   : > { %1024 = vmatprep.mubr.bf16.mxu0 %v2616_v4  ;;  %2070 = vmatprep.mubr.msk.bf16.mxu1 %vm2617_vm0, %v2615_v3 }
 0x1c0   : > { %995 = vmatpush1.bf16.msra.mxu0 %v2873_v33  ;;  %2057 = vmatpush3.bf16.msra.mxu1 %v2880_v35 }
 0x1c1   : > { %996 = vmatprep.subr.bf16.mxu0 %v2876_v34  ;;  %2058 = vmatprep.subr.bf16.mxu1 %v2615_v3 }
 0x1c4   : > { %997 = vmatpush1.bf16.msra.mxu0 %v2887_v36  ;;  %2059 = vmatpush3.bf16.msra.mxu1 %v2893_v38 }
 0x1c5   : > { %998 = vmatprep.subr.bf16.mxu0 %v2890_v37  ;;  %2060 = vmatprep.subr.bf16.mxu1 %v2615_v3 }
 0x1c8   : > { %999 = vmatpush1.bf16.msra.mxu0 %v2897_v39  ;;  %2061 = vmatpush3.bf16.msra.mxu1 %v2903_v41 }
 0x1c9   : > { %1000 = vmatprep.subr.bf16.mxu0 %v2900_v40  ;;  %2062 = vmatprep.subr.bf16.mxu1 %v2615_v3 }
 0x1cc   : > { %1001 = vmatpush1.bf16.msra.mxu0 %v2907_v42  ;;  %2063 = vmatpush3.bf16.msra.mxu1 %v2913_v44 }
 0x1cd   : > { %1002 = vmatprep.subr.bf16.mxu0 %v2910_v43  ;;  %2064 = vmatprep.subr.bf16.mxu1 %v2615_v3 }
 0x1d0   : > { %1003 = vmatpush1.bf16.msra.mxu0 %v2917_v45  ;;  %2065 = vmatpush3.bf16.msra.mxu1 %v2923_v47 }
 0x1d1   : > { %1004 = vmatprep.subr.bf16.mxu0 %v2920_v46  ;;  %2066 = vmatprep.subr.bf16.mxu1 %v2615_v3 }
 0x1d4   : > { %1005 = vmatpush1.bf16.msra.mxu0 %v2927_v48  ;;  %2067 = vmatpush3.bf16.msra.mxu1 %v2933_v50 }
 0x1d5   : > { %1006 = vmatprep.subr.bf16.mxu0 %v2930_v49  ;;  %2068 = vmatprep.subr.bf16.mxu1 %v2615_v3 }
 0x1d8   : > { %1007 = vmatpush1.bf16.msra.mxu0 %v2937_v51  ;;  %2069 = vmatpush3.bf16.msra.mxu1 %v2943_v53 }
 0x1d9   : > { %1110 = vmatprep.subr.bf16.mxu0 %v2862_v28  ;;  %2074 = vmatprep.subr.bf16.mxu1 %v2615_v3 }
 0x28e   : > { %v908_v9 = vpop.f32.mrb[8].mxu0  ;;  %v949_v10 = vpop.f32.mrb[8].mxu1 }
 0x28f   : > { %v955_v11 = vadd.f32 %v908_v9, %v872_v52  ;;  %v910_v12 = vpop.f32.mrb[9].mxu0  ;;  %v2052_v13 = vpop.f32.mrb[9].mxu1  ;;  %v972_v26 = vadd.f32 %v949_v10, %v2993_v55  ;;  %v1081_v9 = vrot.slane %v990_v2, 1 }
 0x290   : > { %v912_v15 = vpop.f32.mrb[10].mxu0  ;;  %v952_v16 = vpop.f32.mrb[10].mxu1  ;;  %v965_v20 = vadd.f32 %v963_v14, %v910_v12 }
 0x291   : > { %v1892_v17 = vmul.f32 -1.442695, %v955_v11  ;;  %v913_v18 = vpop.f32.mrb[11].mxu0  ;;  %v2053_v19 = vpop.f32.mrb[11].mxu1 }
 0x292   : > { %v1893_v21 = vmul.f32 -1.442695, %v965_v20 }
 0x293   : > { %2327 = vpow2.f32 %v1892_v17 }
 0x294   : > { %2329 = vpow2.f32 %v1893_v21 }
 0x29d   : > { %v2328_v22 = vpop.eup %2327 }
 0x29e   : > { %v959_v23 = vadd.f32 1.0, %v2328_v22  ;;  %v2330_v24 = vpop.eup %2329 }
 0x29f   : > { %v969_v25 = vadd.f32 1.0, %v2330_v24 }
 0x2a0   : > { %2331 = vrcp.f32 %v959_v23  ;;  %v1092_v23 = vrot.slane %v990_v2, 2 }
 0x2a1   : > { %2333 = vrcp.f32 %v969_v25 }
 0x2aa   : > { %v2332_v27 = vpop.eup %2331 }
 0x2ab   : > { %v973_v54 = vmul.f32 %v2332_v27, %v972_v26  ;;  %v2334_v57 = vpop.eup %2333 }
 0x2ac   : > { %v978_v58 = vsub.f32 1.0, %v2334_v57  ;;  %v980_v62 = vmul.f32 %v2334_v57, %v3002_v7 }
 0x2ad   : > { %v976_v56 = vadd.f32 %v974_v29, %v973_v54  ;;  %v1103_v29 = vstv %s1102_s29  ;;  %s1690_s29 = sadd.s32 7, %s2997_s21 }
 0x2ae   : > { %vm1104_vm3 = vcmp.eq.s32.totalorder %v1103_v29, 1  ;;  %p1691_p0 = scmp.lt.s32.totalorder %s1690_s29, 12 }
 0x2af   : > { %2335 = vtanh.f32 %v976_v56 }
 0x2b0   : > { %s1692_s20 = scalar_select %p1691_p0, 1, 0 }
 0x2b9   : > { %v2336_v60 = vpop.eup %2335 }
 0x2ba   : > { %v979_v61 = vmul.f32 %v2336_v60, %v978_v58 }
 0x2bc   : > { %v981_v63 = vadd.f32 %v980_v62, %v979_v61  ;;  %v1108_v61 = vld [vmem:[#allocation2 + $0x3] ss:$8 sm:$0x7] }
 0x2be   : > { %v3047_v0 = vsel %vm986_vm2, %v981_v63, %v3002_v7 }
 0x2bf   : > { %988 = vst [vmem:[%s2844_s9 + $0x1] sm:$0x1] %v3047_v0  ;;  %v991_v1 = vpack.c.bf16 %v3047_v0, %v3047_v0 }
 0x2c1   : > { %1025 = vmatmul.mubr.bf16.vlgmr.msra.gmra.mrb[12].mxu0 %v991_v1  ;;  %2071 = vmatmul.mubr.bf16.vlgmr.msra.gmra.mrb[12].mxu1 %v991_v1 }
 0x2c2   : > { %1111 = vmatpush1.bf16.msra.mxu0 %v2865_v30  ;;  %2075 = vmatpush3.bf16.msra.mxu1 %v2870_v32 }
 0x2c3   : > { %1112 = vmatprep.subr.bf16.mxu0 %v2867_v31  ;;  %2076 = vmatprep.subr.bf16.mxu1 %v2615_v3 }
 0x2c4   : > { %1142 = vmatprep.mubr.bf16.mxu0 %v2616_v4  ;;  %2090 = vmatprep.mubr.msk.bf16.mxu1 %vm2617_vm0, %v2615_v3 }
 0x2c6   : > { %1113 = vmatpush1.bf16.msra.mxu0 %v2873_v33  ;;  %2077 = vmatpush3.bf16.msra.mxu1 %v2880_v35 }
 0x2c7   : > { %1114 = vmatprep.subr.bf16.mxu0 %v2876_v34  ;;  %2078 = vmatprep.subr.bf16.mxu1 %v2615_v3 }
 0x2ca   : > { %1115 = vmatpush1.bf16.msra.mxu0 %v2887_v36  ;;  %2079 = vmatpush3.bf16.msra.mxu1 %v2893_v38 }
 0x2cb   : > { %1116 = vmatprep.subr.bf16.mxu0 %v2890_v37  ;;  %2080 = vmatprep.subr.bf16.mxu1 %v2615_v3 }
 0x2ce   : > { %1117 = vmatpush1.bf16.msra.mxu0 %v2897_v39  ;;  %2081 = vmatpush3.bf16.msra.mxu1 %v2903_v41 }
 0x2cf   : > { %1118 = vmatprep.subr.bf16.mxu0 %v2900_v40  ;;  %2082 = vmatprep.subr.bf16.mxu1 %v2615_v3 }
 0x2d2   : > { %1119 = vmatpush1.bf16.msra.mxu0 %v2907_v42  ;;  %2083 = vmatpush3.bf16.msra.mxu1 %v2913_v44 }
 0x2d3   : > { %1120 = vmatprep.subr.bf16.mxu0 %v2910_v43  ;;  %2084 = vmatprep.subr.bf16.mxu1 %v2615_v3 }
 0x2d6   : > { %1121 = vmatpush1.bf16.msra.mxu0 %v2917_v45  ;;  %2085 = vmatpush3.bf16.msra.mxu1 %v2923_v47 }
 0x2d7   : > { %1122 = vmatprep.subr.bf16.mxu0 %v2920_v46  ;;  %2086 = vmatprep.subr.bf16.mxu1 %v2615_v3 }
 0x2da   : > { %1123 = vmatpush1.bf16.msra.mxu0 %v2927_v48  ;;  %2087 = vmatpush3.bf16.msra.mxu1 %v2933_v50 }
 0x2db   : > { %1124 = vmatprep.subr.bf16.mxu0 %v2930_v49  ;;  %2088 = vmatprep.subr.bf16.mxu1 %v2615_v3 }
 0x2de   : > { %1125 = vmatpush1.bf16.msra.mxu0 %v2937_v51  ;;  %2089 = vmatpush3.bf16.msra.mxu1 %v2943_v53 }
 0x2df   : > { %1228 = vmatprep.subr.bf16.mxu0 %v2862_v28  ;;  %2094 = vmatprep.subr.bf16.mxu1 %v2615_v3 }
 0x394   : > { %v1026_v5 = vpop.f32.mrb[12].mxu0  ;;  %v1067_v6 = vpop.f32.mrb[12].mxu1 }
 0x395   : > { %v1073_v7 = vadd.f32 %v1026_v5, %v990_v2  ;;  %v1028_v8 = vpop.f32.mrb[13].mxu0  ;;  %v2072_v52 = vpop.f32.mrb[13].mxu1  ;;  %v1090_v21 = vadd.f32 %v1067_v6, %v2993_v55  ;;  %v1199_v5 = vrot.slane %v1108_v61, 1 }
 0x396   : > { %v1030_v10 = vpop.f32.mrb[14].mxu0  ;;  %v1070_v11 = vpop.f32.mrb[14].mxu1  ;;  %v1083_v15 = vadd.f32 %v1081_v9, %v1028_v8 }
 0x397   : > { %v1894_v12 = vmul.f32 -1.442695, %v1073_v7  ;;  %v1031_v13 = vpop.f32.mrb[15].mxu0  ;;  %v2073_v14 = vpop.f32.mrb[15].mxu1 }
 0x398   : > { %v1895_v16 = vmul.f32 -1.442695, %v1083_v15 }
 0x399   : > { %2337 = vpow2.f32 %v1894_v12 }
 0x39a   : > { %2339 = vpow2.f32 %v1895_v16 }
 0x3a3   : > { %v2338_v17 = vpop.eup %2337 }
 0x3a4   : > { %v1077_v18 = vadd.f32 1.0, %v2338_v17  ;;  %v2340_v19 = vpop.eup %2339 }
 0x3a5   : > { %v1087_v20 = vadd.f32 1.0, %v2340_v19 }
 0x3a6   : > { %2341 = vrcp.f32 %v1077_v18  ;;  %v1210_v18 = vrot.slane %v1108_v61, 2 }
 0x3a7   : > { %2343 = vrcp.f32 %v1087_v20 }
 0x3b0   : > { %v2342_v22 = vpop.eup %2341 }
 0x3b1   : > { %v1091_v24 = vmul.f32 %v2342_v22, %v1090_v21  ;;  %v2344_v26 = vpop.eup %2343 }
 0x3b2   : > { %v1096_v27 = vsub.f32 1.0, %v2344_v26  ;;  %v1098_v57 = vmul.f32 %v2344_v26, %v3047_v0 }
 0x3b3   : > { %v1094_v25 = vadd.f32 %v1092_v23, %v1091_v24  ;;  %v1221_v23 = vstv %s1220_s11 }
 0x3b4   : > { %vm1222_vm4 = vcmp.eq.s32.totalorder %v1221_v23, 1 }
 0x3b5   : > { %2345 = vtanh.f32 %v1094_v25 }
 0x3bf   : > { %v2346_v54 = vpop.eup %2345 }
 0x3c0   : > { %v1097_v56 = vmul.f32 %v2346_v54, %v1096_v27 }
 0x3c2   : > { %v1099_v58 = vadd.f32 %v1098_v57, %v1097_v56  ;;  %v1226_v56 = vld [vmem:[#allocation2 + $0x4] ss:$8 sm:$0x7] }
 0x3c4   : > { %v3092_v59 = vsel %vm1104_vm3, %v1099_v58, %v3047_v0 }
 0x3c5   : > { %1106 = vst [vmem:[%s2844_s9 + $0x2] sm:$0x1] %v3092_v59  ;;  %v1109_v60 = vpack.c.bf16 %v3092_v59, %v3092_v59 }
 0x3c7   : > { %1143 = vmatmul.mubr.bf16.vlgmr.msra.gmra.mrb[16].mxu0 %v1109_v60  ;;  %2091 = vmatmul.mubr.bf16.vlgmr.msra.gmra.mrb[16].mxu1 %v1109_v60 }
 0x3c8   : > { %1229 = vmatpush1.bf16.msra.mxu0 %v2865_v30  ;;  %2095 = vmatpush3.bf16.msra.mxu1 %v2870_v32 }
 0x3c9   : > { %1230 = vmatprep.subr.bf16.mxu0 %v2867_v31  ;;  %2096 = vmatprep.subr.bf16.mxu1 %v2615_v3 }
 0x3ca   : > { %1260 = vmatprep.mubr.bf16.mxu0 %v2616_v4  ;;  %2110 = vmatprep.mubr.msk.bf16.mxu1 %vm2617_vm0, %v2615_v3 }
 0x3cc   : > { %1231 = vmatpush1.bf16.msra.mxu0 %v2873_v33  ;;  %2097 = vmatpush3.bf16.msra.mxu1 %v2880_v35 }
 0x3cd   : > { %1232 = vmatprep.subr.bf16.mxu0 %v2876_v34  ;;  %2098 = vmatprep.subr.bf16.mxu1 %v2615_v3 }
 0x3d0   : > { %1233 = vmatpush1.bf16.msra.mxu0 %v2887_v36  ;;  %2099 = vmatpush3.bf16.msra.mxu1 %v2893_v38 }
 0x3d1   : > { %1234 = vmatprep.subr.bf16.mxu0 %v2890_v37  ;;  %2100 = vmatprep.subr.bf16.mxu1 %v2615_v3 }
 0x3d4   : > { %1235 = vmatpush1.bf16.msra.mxu0 %v2897_v39  ;;  %2101 = vmatpush3.bf16.msra.mxu1 %v2903_v41 }
 0x3d5   : > { %1236 = vmatprep.subr.bf16.mxu0 %v2900_v40  ;;  %2102 = vmatprep.subr.bf16.mxu1 %v2615_v3 }
 0x3d8   : > { %1237 = vmatpush1.bf16.msra.mxu0 %v2907_v42  ;;  %2103 = vmatpush3.bf16.msra.mxu1 %v2913_v44 }
 0x3d9   : > { %1238 = vmatprep.subr.bf16.mxu0 %v2910_v43  ;;  %2104 = vmatprep.subr.bf16.mxu1 %v2615_v3 }
 0x3dc   : > { %1239 = vmatpush1.bf16.msra.mxu0 %v2917_v45  ;;  %2105 = vmatpush3.bf16.msra.mxu1 %v2923_v47 }
 0x3dd   : > { %1240 = vmatprep.subr.bf16.mxu0 %v2920_v46  ;;  %2106 = vmatprep.subr.bf16.mxu1 %v2615_v3 }
 0x3e0   : > { %1241 = vmatpush1.bf16.msra.mxu0 %v2927_v48  ;;  %2107 = vmatpush3.bf16.msra.mxu1 %v2933_v50 }
 0x3e1   : > { %1242 = vmatprep.subr.bf16.mxu0 %v2930_v49  ;;  %2108 = vmatprep.subr.bf16.mxu1 %v2615_v3 }
 0x3e4   : > { %1243 = vmatpush1.bf16.msra.mxu0 %v2937_v51  ;;  %2109 = vmatpush3.bf16.msra.mxu1 %v2943_v53 }
 0x3e5   : > { %1346 = vmatprep.subr.bf16.mxu0 %v2862_v28  ;;  %2114 = vmatprep.subr.bf16.mxu1 %v2615_v3 }
 0x49a   : > { %v1144_v62 = vpop.f32.mrb[16].mxu0  ;;  %v1185_v63 = vpop.f32.mrb[16].mxu1 }
 0x49b   : > { %v1191_v0 = vadd.f32 %v1144_v62, %v1108_v61  ;;  %v1146_v1 = vpop.f32.mrb[17].mxu0  ;;  %v2092_v2 = vpop.f32.mrb[17].mxu1  ;;  %v1208_v16 = vadd.f32 %v1185_v63, %v2993_v55  ;;  %v1317_v62 = vrot.slane %v1226_v56, 1 }
 0x49c   : > { %v1148_v6 = vpop.f32.mrb[18].mxu0  ;;  %v1188_v7 = vpop.f32.mrb[18].mxu1  ;;  %v1201_v10 = vadd.f32 %v1199_v5, %v1146_v1 }
 0x49d   : > { %v1896_v8 = vmul.f32 -1.442695, %v1191_v0  ;;  %v1149_v52 = vpop.f32.mrb[19].mxu0  ;;  %v2093_v9 = vpop.f32.mrb[19].mxu1 }
 0x49e   : > { %v1897_v11 = vmul.f32 -1.442695, %v1201_v10 }
 0x49f   : > { %2347 = vpow2.f32 %v1896_v8 }
 0x4a0   : > { %2349 = vpow2.f32 %v1897_v11 }
 0x4a9   : > { %v2348_v12 = vpop.eup %2347 }
 0x4aa   : > { %v1195_v13 = vadd.f32 1.0, %v2348_v12  ;;  %v2350_v14 = vpop.eup %2349  ;;  %v1328_v12 = vrot.slane %v1226_v56, 2 }
 0x4ab   : > { %v1205_v15 = vadd.f32 1.0, %v2350_v14 }
 0x4ac   : > { %2351 = vrcp.f32 %v1195_v13 }
 0x4ad   : > { %2353 = vrcp.f32 %v1205_v15 }
 0x4b6   : > { %v2352_v17 = vpop.eup %2351 }
 0x4b7   : > { %v1209_v19 = vmul.f32 %v2352_v17, %v1208_v16  ;;  %v2354_v21 = vpop.eup %2353  ;;  %v1339_v17 = vstv %s1338_s22 }
 0x4b8   : > { %v1214_v22 = vsub.f32 1.0, %v2354_v21  ;;  %v1216_v26 = vmul.f32 %v2354_v21, %v3092_v59  ;;  %vm1340_vm5 = vcmp.eq.s32.totalorder %v1339_v17, 1  ;;  %v2420_v17 = vld [vmem:[#allocation9 + $0xb0] ss:$12 sps:$4 sm:$0xff]  }
 0x4b9   : > { %v1212_v20 = vadd.f32 %v1210_v18, %v1209_v19 }
 0x4bb   : > { %2355 = vtanh.f32 %v1212_v20 }
 0x4c5   : > { %v2356_v24 = vpop.eup %2355 }
 0x4c6   : > { %v1215_v25 = vmul.f32 %v2356_v24, %v1214_v22 }
 0x4c8   : > { %v1217_v27 = vadd.f32 %v1216_v26, %v1215_v25 }
 0x4ca   : > { %v3137_v29 = vsel %vm1222_vm4, %v1217_v27, %v3092_v59  ;;  %v1457_v27 = vstv %s1456_s18 }
 0x4cb   : > { %1224 = vst [vmem:[%s2844_s9 + $0x3] sm:$0x1] %v3137_v29  ;;  %v1227_v54 = vpack.c.bf16 %v3137_v29, %v3137_v29  ;;  %vm1458_vm6 = vcmp.eq.s32.totalorder %v1457_v27, 1 }
 0x4cd   : > { %1261 = vmatmul.mubr.bf16.vlgmr.msra.gmra.mrb[20].mxu0 %v1227_v54  ;;  %2111 = vmatmul.mubr.bf16.vlgmr.msra.gmra.mrb[20].mxu1 %v1227_v54 }
 0x4ce   : > { %1347 = vmatpush1.bf16.msra.mxu0 %v2865_v30  ;;  %2115 = vmatpush3.bf16.msra.mxu1 %v2870_v32 }
 0x4cf   : > { %1348 = vmatprep.subr.bf16.mxu0 %v2867_v31  ;;  %2116 = vmatprep.subr.bf16.mxu1 %v2615_v3 }
 0x4d0   : > { %1378 = vmatprep.mubr.bf16.mxu0 %v2616_v4  ;;  %2130 = vmatprep.mubr.msk.bf16.mxu1 %vm2617_vm0, %v2615_v3 }
 0x4d2   : > { %1349 = vmatpush1.bf16.msra.mxu0 %v2873_v33  ;;  %2117 = vmatpush3.bf16.msra.mxu1 %v2880_v35 }
 0x4d3   : > { %1350 = vmatprep.subr.bf16.mxu0 %v2876_v34  ;;  %2118 = vmatprep.subr.bf16.mxu1 %v2615_v3 }
 0x4d6   : > { %1351 = vmatpush1.bf16.msra.mxu0 %v2887_v36  ;;  %2119 = vmatpush3.bf16.msra.mxu1 %v2893_v38 }
 0x4d7   : > { %1352 = vmatprep.subr.bf16.mxu0 %v2890_v37  ;;  %2120 = vmatprep.subr.bf16.mxu1 %v2615_v3 }
 0x4da   : > { %1353 = vmatpush1.bf16.msra.mxu0 %v2897_v39  ;;  %2121 = vmatpush3.bf16.msra.mxu1 %v2903_v41 }
 0x4db   : > { %1354 = vmatprep.subr.bf16.mxu0 %v2900_v40  ;;  %2122 = vmatprep.subr.bf16.mxu1 %v2615_v3 }
 0x4de   : > { %1355 = vmatpush1.bf16.msra.mxu0 %v2907_v42  ;;  %2123 = vmatpush3.bf16.msra.mxu1 %v2913_v44 }
 0x4df   : > { %1356 = vmatprep.subr.bf16.mxu0 %v2910_v43  ;;  %2124 = vmatprep.subr.bf16.mxu1 %v2615_v3 }
 0x4e2   : > { %1357 = vmatpush1.bf16.msra.mxu0 %v2917_v45  ;;  %2125 = vmatpush3.bf16.msra.mxu1 %v2923_v47 }
 0x4e3   : > { %1358 = vmatprep.subr.bf16.mxu0 %v2920_v46  ;;  %2126 = vmatprep.subr.bf16.mxu1 %v2615_v3 }
 0x4e6   : > { %1359 = vmatpush1.bf16.msra.mxu0 %v2927_v48  ;;  %2127 = vmatpush3.bf16.msra.mxu1 %v2933_v50 }
 0x4e7   : > { %1360 = vmatprep.subr.bf16.mxu0 %v2930_v49  ;;  %2128 = vmatprep.subr.bf16.mxu1 %v2615_v3 }
 0x4ea   : > { %1361 = vmatpush1.bf16.msra.mxu0 %v2937_v51  ;;  %2129 = vmatpush3.bf16.msra.mxu1 %v2943_v53 }
 0x4eb   : > { %1464 = vmatprep.subr.bf16.mxu0 %v2862_v28  ;;  %2134 = vmatprep.subr.bf16.mxu1 %v2615_v3 }
 0x5a0   : > { %v1262_v57 = vpop.f32.mrb[20].mxu0  ;;  %v1303_v58 = vpop.f32.mrb[20].mxu1 }
 0x5a1   : > { %v1309_v59 = vadd.f32 %v1262_v57, %v1226_v56  ;;  %v1264_v60 = vpop.f32.mrb[21].mxu0  ;;  %v2112_v61 = vpop.f32.mrb[21].mxu1  ;;  %v1326_v10 = vadd.f32 %v1303_v58, %v2993_v55 }
 0x5a2   : > { %v1266_v63 = vpop.f32.mrb[22].mxu0  ;;  %v1306_v0 = vpop.f32.mrb[22].mxu1  ;;  %v1319_v6 = vadd.f32 %v1317_v62, %v1264_v60  ;;  %v2398_v60 = vld [vmem:[#allocation9] ss:$12 sps:$4 sm:$0xff]   ;;  %v2399_v61 = vld [vmem:[#allocation9 + $0x8] ss:$12 sps:$4 sm:$0xff]  }
 0x5a3   : > { %v1898_v1 = vmul.f32 -1.442695, %v1309_v59  ;;  %v1267_v2 = vpop.f32.mrb[23].mxu0  ;;  %v2113_v5 = vpop.f32.mrb[23].mxu1  ;;  %v2400_v62 = vld [vmem:[#allocation9 + $0x1c] ss:$12 sps:$4 sm:$0xff]  }
 0x5a4   : > { %v1899_v7 = vmul.f32 -1.442695, %v1319_v6  ;;  %v2401_v63 = vld [vmem:[#allocation9 + $0x18] ss:$12 sps:$4 sm:$0xff]   ;;  %v2402_v0 = vld [vmem:[#allocation9 + $0x20] ss:$12 sps:$4 sm:$0xff]  }
 0x5a5   : > { %2357 = vpow2.f32 %v1898_v1  ;;  %v2403_v1 = vld [vmem:[#allocation9 + $0x34] ss:$12 sps:$4 sm:$0xff]   ;;  %v2404_v2 = vld [vmem:[#allocation9 + $0x30] ss:$12 sps:$4 sm:$0xff]   ;;  %v2405_v5 = vld [vmem:[#allocation9 + $0x38] ss:$12 sps:$4 sm:$0xff]  }
 0x5a6   : > { %2359 = vpow2.f32 %v1899_v7  ;;  %v2406_v6 = vld [vmem:[#allocation9 + $0x4c] ss:$12 sps:$4 sm:$0xff]   ;;  %v2408_v7 = vld [vmem:[#allocation9 + $0x50] ss:$12 sps:$4 sm:$0xff]  }
 0x5af   : > { %v2358_v28 = vpop.eup %2357 }
 0x5b0   : > { %v1313_v8 = vadd.f32 1.0, %v2358_v28  ;;  %v2360_v52 = vpop.eup %2359  ;;  %v2409_v28 = vld [vmem:[#allocation9 + $0x64] ss:$12 sps:$4 sm:$0xff]  }
 0x5b1   : > { %v1323_v9 = vadd.f32 1.0, %v2360_v52  ;;  %v2411_v52 = vld [vmem:[#allocation9 + $0x68] ss:$12 sps:$4 sm:$0xff]  }
 0x5b2   : > { %2361 = vrcp.f32 %v1313_v8  ;;  %v2410_v8 = vld [vmem:[#allocation9 + $0x60] ss:$12 sps:$4 sm:$0xff]  }
 0x5b3   : > { %2363 = vrcp.f32 %v1323_v9  ;;  %v2412_v9 = vld [vmem:[#allocation9 + $0x7c] ss:$12 sps:$4 sm:$0xff]  }
 0x5bc   : > { %v2362_v11 = vpop.eup %2361 }
 0x5bd   : > { %v1327_v13 = vmul.f32 %v2362_v11, %v1326_v10  ;;  %v2364_v15 = vpop.eup %2363  ;;  %v2413_v10 = vld [vmem:[#allocation9 + $0x78] ss:$12 sps:$4 sm:$0xff]   ;;  %v2414_v11 = vld [vmem:[#allocation9 + $0x80] ss:$12 sps:$4 sm:$0xff]  }
 0x5be   : > { %v1332_v16 = vsub.f32 1.0, %v2364_v15  ;;  %v1334_v20 = vmul.f32 %v2364_v15, %v3137_v29  ;;  %v2418_v15 = vld [vmem:[#allocation9 + $0xac] ss:$12 sps:$4 sm:$0xff]  }
 0x5bf   : > { %v1330_v14 = vadd.f32 %v1328_v12, %v1327_v13  ;;  %v2415_v12 = vld [vmem:[#allocation9 + $0x94] ss:$12 sps:$4 sm:$0xff]   ;;  %v2416_v13 = vld [vmem:[#allocation9 + $0x90] ss:$12 sps:$4 sm:$0xff]  }
 0x5c1   : > { %2365 = vtanh.f32 %v1330_v14  ;;  %v2417_v14 = vld [vmem:[#allocation9 + $0x98] ss:$12 sps:$4 sm:$0xff]  }
 0x5cb   : > { %v2366_v18 = vpop.eup %2365 }
 0x5cc   : > { %v1333_v19 = vmul.f32 %v2366_v18, %v1332_v16  ;;  %v2419_v16 = vld [vmem:[#allocation9 + $0xa8] ss:$12 sps:$4 sm:$0xff]   ;;  %v1462_v18 = vld [vmem:[#allocation2 + $0x6] ss:$8 sm:$0x7] }
 0x5ce   : > { %v1335_v21 = vadd.f32 %v1334_v20, %v1333_v19 }
 0x5d0   : > { %v3182_v22 = vsel %vm1340_vm5, %v1335_v21, %v3137_v29 }
 0x5d1   : > { %1342 = vst [vmem:[%s2844_s9 + $0x4] sm:$0x1] %v3182_v22  ;;  %v1345_v23 = vpack.c.bf16 %v3182_v22, %v3182_v22 }
 0x5d3   : > { %1379 = vmatmul.mubr.bf16.vlgmr.msra.gmra.mrb[24].mxu0 %v1345_v23  ;;  %2131 = vmatmul.mubr.bf16.vlgmr.msra.gmra.mrb[24].mxu1 %v1345_v23 }
 0x5d4   : > { %1465 = vmatpush1.bf16.msra.mxu0 %v2865_v30  ;;  %2135 = vmatpush3.bf16.msra.mxu1 %v2870_v32  ;;  %v2397_v30 = vld [vmem:[#allocation9 + $0x4] ss:$12 sps:$4 sm:$0xff]  }
 0x5d5   : > { %1466 = vmatprep.subr.bf16.mxu0 %v2867_v31  ;;  %2136 = vmatprep.subr.bf16.mxu1 %v2615_v3  ;;  %v1344_v31 = vld [vmem:[#allocation2 + $0x5] ss:$8 sm:$0x7] }
 0x5d6   : > { %1496 = vmatprep.mubr.bf16.mxu0 %v2616_v4  ;;  %2150 = vmatprep.mubr.msk.bf16.mxu1 %vm2617_vm0, %v2615_v3 }
 0x5d8   : > { %1467 = vmatpush1.bf16.msra.mxu0 %v2873_v33  ;;  %2137 = vmatpush3.bf16.msra.mxu1 %v2880_v35 }
 0x5d9   : > { %1468 = vmatprep.subr.bf16.mxu0 %v2876_v34  ;;  %2138 = vmatprep.subr.bf16.mxu1 %v2615_v3 }
 0x5dc   : > { %1469 = vmatpush1.bf16.msra.mxu0 %v2887_v36  ;;  %2139 = vmatpush3.bf16.msra.mxu1 %v2893_v38 }
 0x5dd   : > { %1470 = vmatprep.subr.bf16.mxu0 %v2890_v37  ;;  %2140 = vmatprep.subr.bf16.mxu1 %v2615_v3  ;;  %v1435_v37 = vrot.slane %v1344_v31, 1 }
 0x5e0   : > { %1471 = vmatpush1.bf16.msra.mxu0 %v2897_v39  ;;  %2141 = vmatpush3.bf16.msra.mxu1 %v2903_v41 }
 0x5e1   : > { %1472 = vmatprep.subr.bf16.mxu0 %v2900_v40  ;;  %2142 = vmatprep.subr.bf16.mxu1 %v2615_v3 }
 0x5e4   : > { %1473 = vmatpush1.bf16.msra.mxu0 %v2907_v42  ;;  %2143 = vmatpush3.bf16.msra.mxu1 %v2913_v44 }
 0x5e5   : > { %1474 = vmatprep.subr.bf16.mxu0 %v2910_v43  ;;  %2144 = vmatprep.subr.bf16.mxu1 %v2615_v3 }
 0x5e8   : > { %1475 = vmatpush1.bf16.msra.mxu0 %v2917_v45  ;;  %2145 = vmatpush3.bf16.msra.mxu1 %v2923_v47 }
 0x5e9   : > { %1476 = vmatprep.subr.bf16.mxu0 %v2920_v46  ;;  %2146 = vmatprep.subr.bf16.mxu1 %v2615_v3 }
 0x5ec   : > { %1477 = vmatpush1.bf16.msra.mxu0 %v2927_v48  ;;  %2147 = vmatpush3.bf16.msra.mxu1 %v2933_v50 }
 0x5ed   : > { %1478 = vmatprep.subr.bf16.mxu0 %v2930_v49  ;;  %2148 = vmatprep.subr.bf16.mxu1 %v2615_v3 }
 0x5f0   : > { %1479 = vmatpush1.bf16.msra.mxu0 %v2937_v51  ;;  %2149 = vmatpush3.bf16.msra.mxu1 %v2943_v53  ;;  %v1446_v51 = vrot.slane %v1344_v31, 2 }
 0x5f1   : > { %1582 = vmatprep.subr.bf16.mxu0 %v2397_v30  ;;  %2154 = vmatprep.subr.bf16.mxu1 %v2615_v3  ;;  %v1553_v30 = vrot.slane %v1462_v18, 1 }
 0x6a6   : > { %v1380_v32 = vpop.f32.mrb[24].mxu0  ;;  %v1421_v33 = vpop.f32.mrb[24].mxu1 }
 0x6a7   : > { %v1427_v34 = vadd.f32 %v1380_v32, %v1344_v31  ;;  %v1382_v35 = vpop.f32.mrb[25].mxu0  ;;  %v2132_v36 = vpop.f32.mrb[25].mxu1  ;;  %v1444_v49 = vadd.f32 %v1421_v33, %v2993_v55 }
 0x6a8   : > { %v1384_v38 = vpop.f32.mrb[26].mxu0  ;;  %v1424_v39 = vpop.f32.mrb[26].mxu1  ;;  %v1437_v43 = vadd.f32 %v1435_v37, %v1382_v35 }
 0x6a9   : > { %v1900_v40 = vmul.f32 -1.442695, %v1427_v34  ;;  %v1385_v41 = vpop.f32.mrb[27].mxu0  ;;  %v2133_v42 = vpop.f32.mrb[27].mxu1 }
 0x6aa   : > { %v1901_v44 = vmul.f32 -1.442695, %v1437_v43  ;;  %v1564_v43 = vrot.slane %v1462_v18, 2 }
 0x6ab   : > { %2367 = vpow2.f32 %v1900_v40 }
 0x6ac   : > { %2369 = vpow2.f32 %v1901_v44 }
 0x6b5   : > { %v2368_v45 = vpop.eup %2367 }
 0x6b6   : > { %v1431_v46 = vadd.f32 1.0, %v2368_v45  ;;  %v2370_v47 = vpop.eup %2369 }
 0x6b7   : > { %v1441_v48 = vadd.f32 1.0, %v2370_v47 }
 0x6b8   : > { %2371 = vrcp.f32 %v1431_v46 }
 0x6b9   : > { %2373 = vrcp.f32 %v1441_v48  ;;  %v1575_v48 = vstv %s1574_s19 }
 0x6ba   : > { %vm1576_vm7 = vcmp.eq.s32.totalorder %v1575_v48, 1 }
 0x6c2   : > { %v2372_v50 = vpop.eup %2371 }
 0x6c3   : > { %v1445_v53 = vmul.f32 %v2372_v50, %v1444_v49  ;;  %v2374_v25 = vpop.eup %2373 }
 0x6c4   : > { %v1450_v26 = vsub.f32 1.0, %v2374_v25  ;;  %v1452_v56 = vmul.f32 %v2374_v25, %v3182_v22  ;;  %v1580_v25 = vld [vmem:[#allocation2 + $0x7] ss:$8 sm:$0x7] }
 0x6c5   : > { %v1448_v24 = vadd.f32 %v1446_v51, %v1445_v53 }
 0x6c7   : > { %2375 = vtanh.f32 %v1448_v24 }
 0x6d1   : > { %v2376_v29 = vpop.eup %2375 }
 0x6d2   : > { %v1451_v54 = vmul.f32 %v2376_v29, %v1450_v26 }
 0x6d4   : > { %v1453_v57 = vadd.f32 %v1452_v56, %v1451_v54 }
 0x6d6   : > { %v3226_v58 = vsel %vm1458_vm6, %v1453_v57, %v3182_v22  ;;  %v1671_v57 = vrot.slane %v1580_v25, 1 }
 0x6d7   : > { %1460 = vst [vmem:[%s2844_s9 + $0x5] sm:$0x1] %v3226_v58  ;;  %v1463_v59 = vpack.c.bf16 %v3226_v58, %v3226_v58 }
 0x6d9   : > { %1497 = vmatmul.mubr.bf16.vlgmr.msra.gmra.mrb[28].mxu0 %v1463_v59  ;;  %2151 = vmatmul.mubr.bf16.vlgmr.msra.gmra.mrb[28].mxu1 %v1463_v59 }
 0x6da   : > { %1583 = vmatpush1.bf16.msra.mxu0 %v2398_v60  ;;  %2155 = vmatpush3.bf16.msra.mxu1 %v2399_v61 }
 0x6db   : > { %1584 = vmatprep.subr.bf16.mxu0 %v2400_v62  ;;  %2156 = vmatprep.subr.bf16.mxu1 %v2615_v3 }
 0x6dc   : > { %1614 = vmatprep.mubr.bf16.mxu0 %v2616_v4  ;;  %2170 = vmatprep.mubr.msk.bf16.mxu1 %vm2617_vm0, %v2615_v3  ;;  %v2407_v4 = vld [vmem:[#allocation9 + $0x48] ss:$12 sps:$4 sm:$0xff]  }
 0x6de   : > { %1585 = vmatpush1.bf16.msra.mxu0 %v2401_v63  ;;  %2157 = vmatpush3.bf16.msra.mxu1 %v2402_v0 }
 0x6df   : > { %1586 = vmatprep.subr.bf16.mxu0 %v2403_v1  ;;  %2158 = vmatprep.subr.bf16.mxu1 %v2615_v3 }
 0x6e2   : > { %1587 = vmatpush1.bf16.msra.mxu0 %v2404_v2  ;;  %2159 = vmatpush3.bf16.msra.mxu1 %v2405_v5 }
 0x6e3   : > { %1588 = vmatprep.subr.bf16.mxu0 %v2406_v6  ;;  %2160 = vmatprep.subr.bf16.mxu1 %v2615_v3 }
 0x6e6   : > { %1589 = vmatpush1.bf16.msra.mxu0 %v2407_v4  ;;  %2161 = vmatpush3.bf16.msra.mxu1 %v2408_v7  ;;  %v2421_v4 = vld [vmem:[%s3322_s4] sm:$0x1] }
 0x6e7   : > { %1590 = vmatprep.subr.bf16.mxu0 %v2409_v28  ;;  %2162 = vmatprep.subr.bf16.mxu1 %v2615_v3 }
 0x6ea   : > { %1591 = vmatpush1.bf16.msra.mxu0 %v2410_v8  ;;  %2163 = vmatpush3.bf16.msra.mxu1 %v2411_v52  ;;  %v1682_v8 = vrot.slane %v1580_v25, 2 }
 0x6eb   : > { %1592 = vmatprep.subr.bf16.mxu0 %v2412_v9  ;;  %2164 = vmatprep.subr.bf16.mxu1 %v2615_v3 }
 0x6ee   : > { %1593 = vmatpush1.bf16.msra.mxu0 %v2413_v10  ;;  %2165 = vmatpush3.bf16.msra.mxu1 %v2414_v11 }
 0x6ef   : > { %1594 = vmatprep.subr.bf16.mxu0 %v2415_v12  ;;  %2166 = vmatprep.subr.bf16.mxu1 %v2615_v3  ;;  %v1693_v12 = vstv %s1692_s20 }
 0x6f0   : > { %vm1694_vm8 = vcmp.eq.s32.totalorder %v1693_v12, 1 }
 0x6f2   : > { %1595 = vmatpush1.bf16.msra.mxu0 %v2416_v13  ;;  %2167 = vmatpush3.bf16.msra.mxu1 %v2417_v14 }
 0x6f3   : > { %1596 = vmatprep.subr.bf16.mxu0 %v2418_v15  ;;  %2168 = vmatprep.subr.bf16.mxu1 %v2615_v3 }
 0x6f6   : > { %1597 = vmatpush1.bf16.msra.mxu0 %v2419_v16  ;;  %2169 = vmatpush3.bf16.msra.mxu1 %v2420_v17 }
 0x7ac   : > { %v1498_v19 = vpop.f32.mrb[28].mxu0  ;;  %v1539_v20 = vpop.f32.mrb[28].mxu1 }
 0x7ad   : > { %v1545_v21 = vadd.f32 %v1498_v19, %v1462_v18  ;;  %v1500_v22 = vpop.f32.mrb[29].mxu0  ;;  %v2152_v23 = vpop.f32.mrb[29].mxu1  ;;  %v1562_v41 = vadd.f32 %v1539_v20, %v2993_v55 }
 0x7ae   : > { %v1502_v31 = vpop.f32.mrb[30].mxu0  ;;  %v1542_v32 = vpop.f32.mrb[30].mxu1  ;;  %v1555_v36 = vadd.f32 %v1553_v30, %v1500_v22 }
 0x7af   : > { %v1902_v33 = vmul.f32 -1.442695, %v1545_v21  ;;  %v1503_v34 = vpop.f32.mrb[31].mxu0  ;;  %v2153_v35 = vpop.f32.mrb[31].mxu1 }
 0x7b0   : > { %v1903_v3 = vmul.f32 -1.442695, %v1555_v36 }
 0x7b1   : > { %2377 = vpow2.f32 %v1902_v33 }
 0x7b2   : > { %2379 = vpow2.f32 %v1903_v3 }
 0x7bb   : > { %v2378_v37 = vpop.eup %2377 }
 0x7bc   : > { %v1549_v38 = vadd.f32 1.0, %v2378_v37  ;;  %v2380_v39 = vpop.eup %2379 }
 0x7bd   : > { %v1559_v40 = vadd.f32 1.0, %v2380_v39 }
 0x7be   : > { %2381 = vrcp.f32 %v1549_v38 }
 0x7bf   : > { %2383 = vrcp.f32 %v1559_v40 }
 0x7c8   : > { %v2382_v42 = vpop.eup %2381 }
 0x7c9   : > { %v1563_v44 = vmul.f32 %v2382_v42, %v1562_v41  ;;  %v2384_v46 = vpop.eup %2383 }
 0x7ca   : > { %v1568_v47 = vsub.f32 1.0, %v2384_v46  ;;  %v1570_v51 = vmul.f32 %v2384_v46, %v3226_v58 }
 0x7cb   : > { %v1566_v45 = vadd.f32 %v1564_v43, %v1563_v44 }
 0x7cd   : > { %2385 = vtanh.f32 %v1566_v45 }
 0x7d7   : > { %v2386_v49 = vpop.eup %2385 }
 0x7d8   : > { %v1569_v50 = vmul.f32 %v2386_v49, %v1568_v47 }
 0x7da   : > { %v1571_v53 = vadd.f32 %v1570_v51, %v1569_v50 }
 0x7dc   : > { %v1577_v55 = vsel %vm1576_vm7, %v1571_v53, %v3226_v58 }
 0x7dd   : > { %1578 = vst [vmem:[%s2844_s9 + $0x6] sm:$0x1] %v1577_v55  ;;  %v1581_v24 = vpack.c.bf16 %v1577_v55, %v1577_v55 }
 0x7df   : > { %1615 = vmatmul.mubr.bf16.vlgmr.msra.gmra.mrb[32].mxu0 %v1581_v24  ;;  %2171 = vmatmul.mubr.bf16.vlgmr.msra.gmra.mrb[32].mxu1 %v1581_v24 }
 0x8b2   : > { %v1616_v26 = vpop.f32.mrb[32].mxu0  ;;  %v1657_v27 = vpop.f32.mrb[32].mxu1 }
 0x8b3   : > { %v1663_v29 = vadd.f32 %v1616_v26, %v1580_v25  ;;  %v1618_v54 = vpop.f32.mrb[33].mxu0  ;;  %v2172_v56 = vpop.f32.mrb[33].mxu1  ;;  %v1680_v7 = vadd.f32 %v2421_v4, %v1657_v27 }
 0x8b4   : > { %v1620_v59 = vpop.f32.mrb[34].mxu0  ;;  %v1660_v60 = vpop.f32.mrb[34].mxu1  ;;  %v1673_v0 = vadd.f32 %v1671_v57, %v1618_v54 }
 0x8b5   : > { %v1904_v61 = vmul.f32 -1.442695, %v1663_v29  ;;  %v1621_v62 = vpop.f32.mrb[35].mxu0  ;;  %v2173_v63 = vpop.f32.mrb[35].mxu1 }
 0x8b6   : > { %v1905_v58 = vmul.f32 -1.442695, %v1673_v0 }
 0x8b7   : > { %2387 = vpow2.f32 %v1904_v61 }
 0x8b8   : > { %2389 = vpow2.f32 %v1905_v58 }
 0x8c1   : > { %v2388_v1 = vpop.eup %2387 }
 0x8c2   : > { %v1667_v2 = vadd.f32 1.0, %v2388_v1  ;;  %v2390_v5 = vpop.eup %2389 }
 0x8c3   : > { %v1677_v6 = vadd.f32 1.0, %v2390_v5 }
 0x8c4   : > { %2391 = vrcp.f32 %v1667_v2 }
 0x8c5   : > { %2393 = vrcp.f32 %v1677_v6 }
 0x8ce   : > { %v2392_v28 = vpop.eup %2391 }
 0x8cf   : > { %v1681_v52 = vmul.f32 %v2392_v28, %v1680_v7  ;;  %v2394_v10 = vpop.eup %2393 }
 0x8d0   : > { %v1686_v11 = vsub.f32 1.0, %v2394_v10  ;;  %v1688_v15 = vmul.f32 %v2394_v10, %v1577_v55 }
 0x8d1   : > { %v1684_v9 = vadd.f32 %v1682_v8, %v1681_v52 }
 0x8d3   : > { %2395 = vtanh.f32 %v1684_v9 }
 0x8dd   : > { %v2396_v13 = vpop.eup %2395  ;;  %1701 = sbr.rel (%p1906_p6) target bundleno = 2277 (0x8e5), region = 64 }
 0x8de   : > { %v1687_v14 = vmul.f32 %v2396_v13, %v1686_v11 }
 0x8e0   : > { %v1689_v16 = vadd.f32 %v1688_v15, %v1687_v14 }
 0x8e2   : > { %v1695_v17 = vsel %vm1694_vm8, %v1689_v16, %v1577_v55 }
 0x8e3   : > { %1696 = vst [vmem:[%s2844_s9 + $0x7] sm:$0x1] %v1695_v17  ;;  %1697 = vst [vmem:[#allocation3] sm:$0x1] %v1695_v17 }
 0x8e4   : > { %1702 = vst [vmem:[#allocation11] sm:$0x1] %v1695_v17 }
 0x8e5 PF: > { %s1908_s21 = sshll.u32 %s2681_s28, 7  ;;  %s1717_s10 = sshll.u32 %s2844_s9, 4  ;;  %s1718_s10 = int_to_ptr.vmem [resolvable:$true] %s1717_s10 }
 0x8e6   : > { %s3257_s22 = scalar_lea.hbm %s3324_s6, %s1908_s21  ;;  %s1704_s18 = scalar_lea.sflag [#allocation6], %s2830_s12 }
 0x8e7   : > { %s2508_s15 = scalar_lea.vmem %s1718_s10, 128  ;;  %p3340_p4 = scmp.ne.s32.totalorder %s3334_s16, 0 }
 0x8e8   : > { %p2509_p8 = scmp.ne.s32.totalorder %s1718_s10, %s2508_s15  ;;  %s2618_s19 = smov [#allocation10]  }
 0x8e9   : > { %s2512_s14 = sshll.u32 %s2618_s19, 4  ;;  %s2513_s14 = int_to_ptr.vmem [resolvable:$false] %s2512_s14 }
 0x8ea   : > { %p2510_p5 = pnand %p2509_p8, %p3340_p4  ;;  %s2514_s23 = scalar_lea.vmem %s2513_s14, 256 }
 0x8eb   : > { %p2515_p12 = scmp.lt.s32.totalorder %s1718_s10, %s2513_s14  ;;  %p2516_p3 = scmp.lt.s32.totalorder %s2514_s23, %s2508_s15 }
 0x8ec   : > { %p2511_p9 = pneg %p2510_p5 }
 0x8ed   : > { %p2517_p1 = por %p2516_p3, %p2515_p12 }
 0x8ef   : > { %p2518_p11 = pnand %p2517_p1, %p2511_p9 }
 0x8f1   : > { %2521 = shalt.err (!%p2518_p11)
}
 0x8f2   : > { %s2522_s12 = scalar_lea.hbm %s3257_s22, 128  ;;  %s2526_s20 = scalar_lea.hbm %s3324_s6, 256 }
 0x8f3   : > { %p2523_p7 = scmp.ne.s32.totalorder %s3257_s22, %s2522_s12  ;;  %p2527_p2 = scmp.lt.u32.totalorder %s3257_s22, %s3324_s6 }
 0x8f4   : > { %p2528_p0 = scmp.lt.u32.totalorder %s2526_s20, %s2522_s12  ;;  %p2530_p8 = scmp.lt.u32.totalorder %s2522_s12, %s3257_s22 }
 0x8f5   : > { %p2524_p10 = pnand %p2523_p7, %p3340_p4 }
 0x8f6   : > { %p2529_p6 = por %p2528_p0, %p2527_p2 }
 0x8f7   : > { %p2525_p13 = pneg %p2524_p10 }
 0x8f8   : > { %p2531_p5 = por %p2530_p8, %p2529_p6 }
 0x8fa   : > { %p2532_p9 = pnand %p2531_p5, %p2525_p13 }
 0x8fc   : > { %2535 = shalt.err (!%p2532_p9)
}
 0x8fd   : > { %2184 = dma.vmem_to_hbm [thread:$0]  (%p3340_p4), %s1718_s10, 128, %s3257_s22, %s1704_s18  }
 0x8fe   : > { %s2619_s30 = smov [#allocation11]   ;;  %p3341_p3 = scmp.eq.s32.totalorder %s2681_s28, 1 }
 0x8ff   : > { %s1728_s15 = sshll.u32 %s2619_s30, 4  ;;  %s1729_s15 = int_to_ptr.vmem [resolvable:$true] %s1728_s15 }
 0x900   : > { %s2536_s19 = scalar_lea.vmem %s1729_s15, 16  ;;  %s2542_s14 = scalar_lea.vmem %s1729_s15, 32 }
 0x901   : > { %p2537_p12 = scmp.ne.s32.totalorder %s1729_s15, %s2536_s19  ;;  %p2543_p7 = scmp.lt.s32.totalorder %s1729_s15, %s1729_s15 }
 0x902   : > { %p2544_p10 = scmp.lt.s32.totalorder %s2542_s14, %s2536_s19 }
 0x903   : > { %p2538_p1 = pnand %p2537_p12, %p3341_p3 }
 0x904   : > { %p2545_p2 = por %p2544_p10, %p2543_p7 }
 0x905   : > { %p2539_p11 = pneg %p2538_p1 }
 0x907   : > { %p2546_p0 = pnand %p2545_p2, %p2539_p11 }
 0x909   : > { %2549 = shalt.err (!%p2546_p0)
}
 0x90a   : > { %s2550_s16 = scalar_lea.hbm %s3325_s7, 16  ;;  %p3342_p13 = pmov %p3341_p3 }
 0x90b   : > { %p2551_p4 = scmp.ne.s32.totalorder %s3325_s7, %s2550_s16  ;;  %p2556_p5 = scmp.lt.u32.totalorder %s2550_s16, %s3325_s7 }
 0x90d   : > { %p2552_p6 = pnand %p2551_p4, %p3342_p13 }
 0x90f   : > { %p2553_p8 = pneg %p2552_p6 }
 0x911   : > { %p2558_p9 = pnand %p2556_p5, %p2553_p8 }
 0x913   : > { %2561 = shalt.err (!%p2558_p9)
}
 0x914   : > { %p3343_p12 = pmov %p3341_p3 }
 0x916   : > { %2186 = dma.vmem_to_hbm [thread:$0]  (%p3343_p12), %s1729_s15, 16, %s3325_s7, [#allocation12]  }
 0x917   : > { %2587 = dma.done.wait (%p3341_p3), [#allocation12], 16   ;;  %p3344_p1 = pmov %p3341_p3 }
 0x919   : > { %2589 = vsyncadd (%p3344_p1), [#allocation12], 4294967280 }
 0x91a PF: > { %s1744_s21 = sand.u32 1, %s2596_s24   ;;  %p3345_p11 = scmp.ne.s32.totalorder %s3330_s8, 0 }
 0x91b   : > { %p3346_p7 = scmp.ge.s32.totalorder %s2608_s27, 2  ;;  %s1745_s11 = scalar_lea.sflag [#allocation6], %s1744_s21 }
 0x91d   : > { %p2202_p10 = pnand %p3346_p7, %p3345_p11 }
 0x91f   : > { %2591 = dma.done.wait (!%p2202_p10), %s1745_s11, 128  }
 0x920   : > { %2593 = vsyncadd (!%p2202_p10), %s1745_s11, 4294967168  ;;  %p23_p2 = scmp.ge.s32.totalorder %s2771_s13, 4   ;;  %s3347_s24 = smov %s2600_s25 }
 0x921   : > { %s3348_s25 = smov %s2604_s26  ;;  %s3349_s26 = smov %s2787_s17 }
 0x922   : > { %s3350_s27 = smov %s2771_s13  ;;  %25 = sbr.rel (!%p23_p2) target bundleno = 7 (0x7), region = 120 }
 0x929   :  { %1750 = vsyncpa [#allocation5], 1 }
 0x92a   :  { %1752 = vsyncpa [#allocation5 + $0x1], 1 }
 0x92b   :  { %1753 = vsyncpa [#allocation8], 1 }
 0x92c   :  { %1754 = vsyncpa [#allocation6], 1 }
 0x92d   :  { %1756 = vsyncpa [#allocation6 + $0x1], 1 }
 0x92e   :  { %1757 = vsyncpa [#allocation12], 1 }

</bundles_post_ra>
